<compile_context>
chip_gen: v6e
topology: v6e:2x2x1
jax: 0.10.0
libtpu: 0.0.40
codegen_flags: <defaults>
</compile_context>

<pallas_src>
import functools

import jax
import jax.numpy as jnp
from jax.experimental import pallas as pl
from jax.experimental.pallas import tpu as pltpu


# --------------------------------- kernel -----------------------------------
def _bayes_mil_kernel(
    # SMEM scalar inputs
    nvalid_ref, bu_ref,
    # VMEM inputs
    x_ref, w1_ref, b1_ref, wv_ref, bv_ref, wu_ref,
    # outputs
    att_ref, mbag_ref,
    # scratch
    m_s, l_s, acc_s,
    *, block_n,
):
    b = pl.program_id(0)          # branch: 0 = histology, 1 = spatial_rnaseq
    n = pl.program_id(1)          # tile block along the bag (reduction axis)
    nb = pl.num_programs(1)
    sub = block_n // 128

    @pl.when(n == 0)
    def _init():
        m_s[...] = jnp.full_like(m_s, -1e30)
        l_s[...] = jnp.zeros_like(l_s)
        acc_s[...] = jnp.zeros_like(acc_s)

    x = x_ref[0]                  # [block_n, D]  bf16
    w1 = w1_ref[0]                # [D, Hp]       bf16
    b1 = b1_ref[0]                # [1, Hp]       f32
    wv = wv_ref[0]                # [Hp, Hp]      bf16
    bv = bv_ref[0]                # [1, Hp]       f32
    wu = wu_ref[0]                # [1, Hp]       f32

    # embedding + attention MLP: bf16 MXU matmuls with f32 accumulation
    h = jnp.maximum(jnp.dot(x, w1, preferred_element_type=jnp.float32) + b1, 0.0)
    t = jnp.tanh(
        jnp.dot(h.astype(jnp.bfloat16), wv, preferred_element_type=jnp.float32)
        + bv)

    # lane-dense attention logits: [1,Hp] x [block_n,Hp]^T -> [1, block_n]
    # (transposed RHS consumed by the MXU, no XLU transpose of t)
    a_row = pl.dot(wu, t, trans_b=True) + bu_ref[b]

    # mask padded bag positions
    lane = jax.lax.broadcasted_iota(jnp.int32, (1, block_n), 1) + n * block_n
    a_row = jnp.where(lane < nvalid_ref[b], a_row, -1e30)

    # online softmax update (running max / sum / weighted-H accumulator)
    m_prev = m_s[...]
    m_new = jnp.maximum(m_prev, jnp.max(a_row, axis=1, keepdims=True))
    corr = jnp.exp(m_prev - m_new)
    p_row = jnp.exp(a_row - m_new)                                   # [1, block_n]
    l_s[...] = corr * l_s[...] + jnp.sum(p_row, axis=1, keepdims=True)
    # attention-weighted pooling as a [1,block_n] @ [block_n,Hp] MXU matmul
    # (tiny vs the two big matmuls; kept f32 for accuracy)
    acc_s[...] = corr * acc_s[...] + jnp.dot(
        p_row, h, preferred_element_type=jnp.float32)
    m_s[...] = m_new

    # per-step full-block store of the raw masked logits: assemble a dense
    # (sub, 128) sublane x lane tile from the lane-dense logits row.
    a_tile = jnp.concatenate(
        [a_row[:, s * 128:(s + 1) * 128] for s in range(sub)], axis=0)
    att_ref[0, 0, :, :] = a_tile

    @pl.when(n == nb - 1)
    def _finalize():
        # per-branch bag embedding M = sum_i softmax(a)_i * h_i
        mbag_ref[0, :, :] = acc_s[...] / l_s[...]


# --------------------------------- wrapper ----------------------------------
def _round_up(v, m):
    return (v + m - 1) // m * m


def _pad_to(a, shape):
    return jnp.pad(a, [(0, s - d) for d, s in zip(a.shape, shape)])


def _prep_branch(p, d, hp):
    w1 = _pad_to(p["w1"], (d, hp)).astype(jnp.bfloat16)
    b1 = _pad_to(p["b1"].reshape(1, -1), (1, hp)).astype(jnp.float32)
    wv = _pad_to(p["wv"], (hp, hp)).astype(jnp.bfloat16)
    bv = _pad_to(p["bv"].reshape(1, -1), (1, hp)).astype(jnp.float32)
    wu = _pad_to(p["wu"].reshape(1, -1), (1, hp)).astype(jnp.float32)
    bu = p["bu"].reshape(()).astype(jnp.float32)
    return w1, b1, wv, bv, wu, bu


def bayesian_attention_mil(tiles_hist, tiles_st, params, alpha=0.5, block_n=1024):
    """Full BayesianAttentionMIL forward pass (eval semantics)."""
    assert block_n % 128 == 0, "block_n must be a multiple of 128 lanes"
    n_h, d = tiles_hist.shape
    n_s, d2 = tiles_st.shape
    assert d == d2
    assert n_h >= 1 and n_s >= 1, "each MIL bag needs at least one tile"
    hidden = params["hist"]["w1"].shape[1]
    hp = _round_up(hidden, 128)                     # lane-dense hidden dim
    nb = max(int(pl.cdiv(max(n_h, n_s), block_n)), 1)
    n_pad = nb * block_n
    sub = block_n // 128

    # bag tiles, zero-padded to a common [2, n_pad, d] stack, cast to bf16
    # during the copy (halves the extra HBM round trip of the x stream).
    x = jnp.stack([
        _pad_to(tiles_hist.astype(jnp.bfloat16), (n_pad, d)),
        _pad_to(tiles_st.astype(jnp.bfloat16), (n_pad, d)),
    ])

    ph = _prep_branch(params["hist"], d, hp)
    ps = _prep_branch(params["st"], d, hp)
    w1 = jnp.stack([ph[0], ps[0]])                  # [2, d, hp]   bf16
    b1 = jnp.stack([ph[1], ps[1]])                  # [2, 1, hp]   f32
    wv = jnp.stack([ph[2], ps[2]])                  # [2, hp, hp]  bf16
    bv = jnp.stack([ph[3], ps[3]])                  # [2, 1, hp]   f32
    wu = jnp.stack([ph[4], ps[4]])                  # [2, 1, hp]   f32
    bu = jnp.stack([ph[5], ps[5]])                  # [2]          f32 (SMEM)
    nvalid = jnp.array([n_h, n_s], jnp.int32)       # valid bag lengths (SMEM)

    smem = pl.BlockSpec(memory_space=pltpu.MemorySpace.SMEM)

    # explicit VMEM budget: double-buffered x tile + double-buffered weights
    x_tile_b = block_n * d * 2
    w_b = (d * hp + hp * hp) * 2
    bias_b = 3 * hp * 4
    out_b = block_n * 4 + hp * 4
    need = 2 * (x_tile_b + w_b + bias_b + out_b) + 4 * hp * 4 + (4 << 20)
    vmem_limit = int(min(max(need, 32 << 20), 64 << 20))

    cost = pl.CostEstimate(
        flops=int(2 * 2 * n_pad * hp * (d + hp + 2)),
        transcendentals=int(2 * n_pad * (hp + 1)),
        bytes_accessed=int(2 * n_pad * d * 2 + 2 * (d * hp + hp * hp) * 2
                           + 2 * n_pad * 4 + 2 * hp * 4),
    )

    att_logits, mbag = pl.pallas_call(
        functools.partial(_bayes_mil_kernel, block_n=block_n),
        grid=(2, nb),
        in_specs=[
            smem, smem,                                                   # scalars
            pl.BlockSpec((1, block_n, d), lambda b_, n_: (b_, n_, 0)),    # x
            pl.BlockSpec((1, d, hp), lambda b_, n_: (b_, 0, 0)),          # w1
            pl.BlockSpec((1, 1, hp), lambda b_, n_: (b_, 0, 0)),          # b1
            pl.BlockSpec((1, hp, hp), lambda b_, n_: (b_, 0, 0)),         # wv
            pl.BlockSpec((1, 1, hp), lambda b_, n_: (b_, 0, 0)),          # bv
            pl.BlockSpec((1, 1, hp), lambda b_, n_: (b_, 0, 0)),          # wu
        ],
        out_specs=(
            # raw logits: one dense (sub,128) tile per grid step (non-resident)
            pl.BlockSpec((1, 1, sub, 128), lambda b_, n_: (b_, n_, 0, 0)),
            # per-branch bag embedding, resident over the reduction axis
            pl.BlockSpec((1, 1, hp), lambda b_, n_: (b_, 0, 0)),
        ),
        out_shape=(
            jax.ShapeDtypeStruct((2, nb, sub, 128), jnp.float32),
            jax.ShapeDtypeStruct((2, 1, hp), jnp.float32),
        ),
        scratch_shapes=[
            pltpu.VMEM((1, 1), jnp.float32),     # running max
            pltpu.VMEM((1, 1), jnp.float32),     # running sum
            pltpu.VMEM((1, hp), jnp.float32),    # running weighted-H accumulator
        ],
        compiler_params=pltpu.CompilerParams(
            dimension_semantics=("parallel", "arbitrary"),
            vmem_limit_bytes=vmem_limit),
        cost_estimate=cost,
    )(nvalid, bu, x, w1, b1, wv, bv, wu)

    # epilogue (tiny): alpha fusion + classifier head + attention normalization
    a = jnp.asarray(alpha, jnp.float32)
    m_fused = a * mbag[0, 0, :hidden] + (1.0 - a) * mbag[1, 0, :hidden]
    wc = params["clf"]["w"].reshape(-1).astype(jnp.float32)
    bc = params["clf"]["b"].reshape(()).astype(jnp.float32)
    out = jnp.dot(m_fused, wc) + bc

    logits = att_logits.reshape(2, n_pad)
    a_hist = jax.nn.softmax(logits[0, :n_h]).reshape(n_h, 1)
    a_st = jax.nn.softmax(logits[1, :n_s]).reshape(n_s, 1)
    return out, {"histology": a_hist, "spatial_rnaseq": a_st}


# ------------------------- parameter initialization -------------------------
def _init_linear(key, fan_in, fan_out):
    """PyTorch-style uniform init, stored as [in, out] (y = x @ W + b)."""
    kw, kb = jax.random.split(key)
    bound = 1.0 / jnp.sqrt(float(fan_in))
    w = jax.random.uniform(kw, (fan_in, fan_out), jnp.float32, -bound, bound)
    b = jax.random.uniform(kb, (1, fan_out), jnp.float32, -bound, bound)
    return w, b


def init_params(key, input_dim, hidden_dim):
    keys = jax.random.split(key, 7)
    w1h, b1h = _init_linear(keys[0], input_dim, hidden_dim)
    wvh, bvh = _init_linear(keys[1], hidden_dim, hidden_dim)
    wuh, buh = _init_linear(keys[2], hidden_dim, 1)
    w1s, b1s = _init_linear(keys[3], input_dim, hidden_dim)
    wvs, bvs = _init_linear(keys[4], hidden_dim, hidden_dim)
    wus, bus = _init_linear(keys[5], hidden_dim, 1)
    wc, bc = _init_linear(keys[6], hidden_dim, 1)
    return {
        "hist": {"w1": w1h, "b1": b1h, "wv": wvh, "bv": bvh, "wu": wuh, "bu": buh},
        "st":   {"w1": w1s, "b1": b1s, "wv": wvs, "bv": bvs, "wu": wus, "bu": bus},
        "clf":  {"w": wc, "b": bc},
    }


# ------------------------------ pure-JAX reference ---------------------------
def _ref_branch(x, p):
    H = jnp.maximum(x @ p["w1"] + p["b1"], 0.0)
    A = jnp.tanh(H @ p["wv"] + p["bv"]) @ p["wu"] + p["bu"]
    A = jax.nn.softmax(A, axis=0)
    M = jnp.sum(A * H, axis=0, keepdims=True)
    return M, A


def reference_forward(tiles_hist, tiles_st, params, alpha=0.5):
    Mh, Ah = _ref_branch(tiles_hist, params["hist"])
    Ms, As = _ref_branch(tiles_st, params["st"])
    M = alpha * Mh + (1.0 - alpha) * Ms
    out = M @ params["clf"]["w"] + params["clf"]["b"]
    return out[0, 0], Ah, As


if __name__ == "__main__":
    # small MIL bags; hidden_dim=128 matches the module default
    input_dim = 256
    hidden_dim = 128
    n_tiles_hist = 96        # -> one partial block + one fully padded block
    n_tiles_st = 200         # -> one full block + one partial block (block_n=128)
    alpha = 0.35

    key = jax.random.PRNGKey(0)
    k_x1, k_x2, k_p = jax.random.split(key, 3)
    tiles_hist = jax.random.normal(k_x1, (n_tiles_hist, input_dim), jnp.float32)
    tiles_st = jax.random.normal(k_x2, (n_tiles_st, input_dim), jnp.float32)
    params = init_params(k_p, input_dim, hidden_dim)

    ref_out, ref_ah, ref_as = reference_forward(tiles_hist, tiles_st, params, alpha)

    # exercise both the multi-block online-softmax path and a larger tile
    for bn in (128, 512):
        out, attn = bayesian_attention_mil(
            tiles_hist, tiles_st, params, alpha=alpha, block_n=bn)
        out = jax.block_until_ready(out)
        attn = {k: jax.block_until_ready(v) for k, v in attn.items()}

        # bf16 streaming / bf16 matmuls -> loosened tolerances vs f32 reference
        assert jnp.allclose(out, ref_out, atol=5e-2, rtol=5e-2), (bn, out, ref_out)
        assert jnp.allclose(attn["histology"], ref_ah, atol=1e-3, rtol=5e-2), bn
        assert jnp.allclose(attn["spatial_rnaseq"], ref_as, atol=1e-3, rtol=5e-2), bn
        assert jnp.allclose(jnp.sum(attn["histology"]), 1.0, atol=1e-4), bn
        assert jnp.allclose(jnp.sum(attn["spatial_rnaseq"]), 1.0, atol=1e-4), bn

    print("KERNEL_OK")
</pallas_src>

<mosaic_0001>
module attributes {stable_mosaic.version = 11 : i64} {
  func.func @_bayes_mil_kernel(%arg0: i32, %arg1: i32, %arg2: memref<2xi32, #tpu.memory_space<smem>>, %arg3: memref<2xf32, #tpu.memory_space<smem>>, %arg4: memref<1x128x256xbf16, #tpu.memory_space<vmem>>, %arg5: memref<1x256x128xbf16, #tpu.memory_space<vmem>>, %arg6: memref<1x1x128xf32, #tpu.memory_space<vmem>>, %arg7: memref<1x128x128xbf16, #tpu.memory_space<vmem>>, %arg8: memref<1x1x128xf32, #tpu.memory_space<vmem>>, %arg9: memref<1x1x128xf32, #tpu.memory_space<vmem>>, %arg10: memref<1x1x1x128xf32, #tpu.memory_space<vmem>>, %arg11: memref<1x1x128xf32, #tpu.memory_space<vmem>>, %arg12: memref<1x1xf32, #tpu.memory_space<vmem>>, %arg13: memref<1x1xf32, #tpu.memory_space<vmem>>, %arg14: memref<1x128xf32, #tpu.memory_space<vmem>>) attributes {dimension_semantics = [#tpu.dimension_semantics<parallel>, #tpu.dimension_semantics<arbitrary>], iteration_bounds = array<i64: 2, 2>, scalar_prefetch = 0 : i64, scratch_operands = 3 : i64, tpu.core_type = #tpu.core_type<tc>, window_params = [{transform_indices = @transform_0, window_bounds = array<i64: 2>}, {transform_indices = @transform_1, window_bounds = array<i64: 2>}, {transform_indices = @transform_2, window_bounds = array<i64: 1, 128, 256>}, {transform_indices = @transform_3, window_bounds = array<i64: 1, 256, 128>}, {transform_indices = @transform_4, window_bounds = array<i64: 1, 1, 128>}, {transform_indices = @transform_5, window_bounds = array<i64: 1, 128, 128>}, {transform_indices = @transform_6, window_bounds = array<i64: 1, 1, 128>}, {transform_indices = @transform_7, window_bounds = array<i64: 1, 1, 128>}, {transform_indices = @transform_8, window_bounds = array<i64: 1, 1, 1, 128>}, {transform_indices = @transform_9, window_bounds = array<i64: 1, 1, 128>}]} {
    %c0_i32 = arith.constant 0 : i32
    %0 = arith.cmpi eq, %arg1, %c0_i32 : i32
    %1 = arith.extui %0 : i1 to i32
    %c0_i32_0 = arith.constant 0 : i32
    %2 = arith.cmpi ne, %1, %c0_i32_0 : i32
    scf.if %2 {
      %cst_42 = arith.constant -1.000000e+30 : f32
      %68 = vector.broadcast %cst_42 : f32 to vector<1x1xf32>
      %c0_43 = arith.constant 0 : index
      %c0_44 = arith.constant 0 : index
      %69 = vector.load %arg12[%c0_43, %c0_44] : memref<1x1xf32, #tpu.memory_space<vmem>>, vector<1x1xf32>
      tpu.vector_store %arg12[%c0_43, %c0_44], %68 {strides = array<i32>} : memref<1x1xf32, #tpu.memory_space<vmem>>, vector<1x1xf32>,
      %cst_45 = arith.constant 0.000000e+00 : f32
      %70 = vector.broadcast %cst_45 : f32 to vector<1x1xf32>
      %c0_46 = arith.constant 0 : index
      %c0_47 = arith.constant 0 : index
      %71 = vector.load %arg13[%c0_46, %c0_47] : memref<1x1xf32, #tpu.memory_space<vmem>>, vector<1x1xf32>
      tpu.vector_store %arg13[%c0_46, %c0_47], %70 {strides = array<i32>} : memref<1x1xf32, #tpu.memory_space<vmem>>, vector<1x1xf32>,
      %cst_48 = arith.constant 0.000000e+00 : f32
      %72 = vector.broadcast %cst_48 : f32 to vector<1x128xf32>
      %c0_49 = arith.constant 0 : index
      %c0_50 = arith.constant 0 : index
      %73 = vector.load %arg14[%c0_49, %c0_50] : memref<1x128xf32, #tpu.memory_space<vmem>>, vector<1x128xf32>
      tpu.vector_store %arg14[%c0_49, %c0_50], %72 {strides = array<i32>} : memref<1x128xf32, #tpu.memory_space<vmem>>, vector<1x128xf32>,
    } else {
    }
    %c0 = arith.constant 0 : index
    %c0_1 = arith.constant 0 : index
    %c0_2 = arith.constant 0 : index
    %3 = vector.load %arg4[%c0, %c0_1, %c0_2] : memref<1x128x256xbf16, #tpu.memory_space<vmem>>, vector<1x128x256xbf16>
    %4 = vector.shape_cast %3 : vector<1x128x256xbf16> to vector<128x256xbf16>
    %c0_3 = arith.constant 0 : index
    %c0_4 = arith.constant 0 : index
    %c0_5 = arith.constant 0 : index
    %5 = vector.load %arg5[%c0_3, %c0_4, %c0_5] : memref<1x256x128xbf16, #tpu.memory_space<vmem>>, vector<1x256x128xbf16>
    %6 = vector.shape_cast %5 : vector<1x256x128xbf16> to vector<256x128xbf16>
    %c0_6 = arith.constant 0 : index
    %c0_7 = arith.constant 0 : index
    %c0_8 = arith.constant 0 : index
    %7 = vector.load %arg6[%c0_6, %c0_7, %c0_8] : memref<1x1x128xf32, #tpu.memory_space<vmem>>, vector<1x1x128xf32>
    %8 = vector.shape_cast %7 : vector<1x1x128xf32> to vector<1x128xf32>
    %c0_9 = arith.constant 0 : index
    %c0_10 = arith.constant 0 : index
    %c0_11 = arith.constant 0 : index
    %9 = vector.load %arg7[%c0_9, %c0_10, %c0_11] : memref<1x128x128xbf16, #tpu.memory_space<vmem>>, vector<1x128x128xbf16>
    %10 = vector.shape_cast %9 : vector<1x128x128xbf16> to vector<128x128xbf16>
    %c0_12 = arith.constant 0 : index
    %c0_13 = arith.constant 0 : index
    %c0_14 = arith.constant 0 : index
    %11 = vector.load %arg8[%c0_12, %c0_13, %c0_14] : memref<1x1x128xf32, #tpu.memory_space<vmem>>, vector<1x1x128xf32>
    %12 = vector.shape_cast %11 : vector<1x1x128xf32> to vector<1x128xf32>
    %c0_15 = arith.constant 0 : index
    %c0_16 = arith.constant 0 : index
    %c0_17 = arith.constant 0 : index
    %13 = vector.load %arg9[%c0_15, %c0_16, %c0_17] : memref<1x1x128xf32, #tpu.memory_space<vmem>>, vector<1x1x128xf32>
    %14 = vector.shape_cast %13 : vector<1x1x128xf32> to vector<1x128xf32>
    %cst = arith.constant dense<0.000000e+00> : vector<128x128xf32>
    %15 = tpu.matmul %4, %6, %cst {dimension_numbers = #tpu.dot_dimension_numbers<[1], [0], [0], [1], [0, 0, 1, 1], [], []>} : vector<128x256xbf16>, vector<256x128xbf16>, vector<128x128xf32> -> vector<128x128xf32>
    %16 = vector.broadcast %8 : vector<1x128xf32> to vector<128x128xf32>
    %17 = arith.addf %15, %16 : vector<128x128xf32>
    %cst_18 = arith.constant 0.000000e+00 : f32
    %18 = vector.broadcast %cst_18 : f32 to vector<128x128xf32>
    %19 = arith.maximumf %17, %18 : vector<128x128xf32>
    %20 = arith.truncf %19 : vector<128x128xf32> to vector<128x128xbf16>
    %cst_19 = arith.constant dense<0.000000e+00> : vector<128x128xf32>
    %21 = tpu.matmul %20, %10, %cst_19 {dimension_numbers = #tpu.dot_dimension_numbers<[1], [0], [0], [1], [0, 0, 1, 1], [], []>} : vector<128x128xbf16>, vector<128x128xbf16>, vector<128x128xf32> -> vector<128x128xf32>
    %22 = vector.broadcast %12 : vector<1x128xf32> to vector<128x128xf32>
    %23 = arith.addf %21, %22 : vector<128x128xf32>
    %24 = math.tanh %23 : vector<128x128xf32>
    %cst_20 = arith.constant dense<0.000000e+00> : vector<1x128xf32>
    %25 = tpu.matmul %14, %24, %cst_20 {dimension_numbers = #tpu.dot_dimension_numbers<[1], [1], [0], [0], [0, 0, 1, 0], [], []>} : vector<1x128xf32>, vector<128x128xf32>, vector<1x128xf32> -> vector<1x128xf32>
    %26 = arith.index_cast %arg0 : i32 to index
    %27 = memref.load %arg3[%26] : memref<2xf32, #tpu.memory_space<smem>>
    %28 = vector.broadcast %27 : f32 to vector<1x128xf32>
    %29 = arith.addf %25, %28 : vector<1x128xf32>
    %30 = tpu.iota {dimensions = array<i32: 1>} : vector<1x128xi32>
    %c128_i32 = arith.constant 128 : i32
    %31 = arith.muli %arg1, %c128_i32 : i32
    %32 = vector.broadcast %31 : i32 to vector<1x128xi32>
    %33 = arith.addi %30, %32 : vector<1x128xi32>
    %34 = arith.index_cast %arg0 : i32 to index
    %35 = memref.load %arg2[%34] : memref<2xi32, #tpu.memory_space<smem>>
    %36 = vector.broadcast %35 : i32 to vector<1x128xi32>
    %37 = arith.cmpi slt, %33, %36 : vector<1x128xi32>
    %cst_21 = arith.constant -1.000000e+30 : f32
    %38 = vector.broadcast %cst_21 : f32 to vector<1x128xf32>
    %39 = arith.select %37, %29, %38 : vector<1x128xi1>, vector<1x128xf32>
    %c0_22 = arith.constant 0 : index
    %c0_23 = arith.constant 0 : index
    %40 = vector.load %arg12[%c0_22, %c0_23] : memref<1x1xf32, #tpu.memory_space<vmem>>, vector<1x1xf32>
    %cst_24 = arith.constant dense<0xFF800000> : vector<1xf32>
    %41 = vector.multi_reduction <maximumf>, %39, %cst_24 [1] : vector<1x128xf32> to vector<1xf32>
    %42 = vector.shape_cast %41 : vector<1xf32> to vector<1x1xf32>
    %43 = arith.maximumf %40, %42 : vector<1x1xf32>
    %44 = arith.subf %40, %43 : vector<1x1xf32>
    %45 = math.exp %44 : vector<1x1xf32>
    %46 = vector.broadcast %43 : vector<1x1xf32> to vector<1x128xf32>
    %47 = arith.subf %39, %46 : vector<1x128xf32>
    %48 = math.exp %47 : vector<1x128xf32>
    %c0_25 = arith.constant 0 : index
    %c0_26 = arith.constant 0 : index
    %49 = vector.load %arg13[%c0_25, %c0_26] : memref<1x1xf32, #tpu.memory_space<vmem>>, vector<1x1xf32>
    %50 = arith.mulf %45, %49 : vector<1x1xf32>
    %cst_27 = arith.constant dense<0.000000e+00> : vector<1xf32>
    %51 = vector.multi_reduction <add>, %48, %cst_27 [1] : vector<1x128xf32> to vector<1xf32>
    %52 = vector.shape_cast %51 : vector<1xf32> to vector<1x1xf32>
    %53 = arith.addf %50, %52 : vector<1x1xf32>
    %c0_28 = arith.constant 0 : index
    %c0_29 = arith.constant 0 : index
    %54 = vector.load %arg13[%c0_28, %c0_29] : memref<1x1xf32, #tpu.memory_space<vmem>>, vector<1x1xf32>
    tpu.vector_store %arg13[%c0_28, %c0_29], %53 {strides = array<i32>} : memref<1x1xf32, #tpu.memory_space<vmem>>, vector<1x1xf32>,
    %c0_30 = arith.constant 0 : index
    %c0_31 = arith.constant 0 : index
    %55 = vector.load %arg14[%c0_30, %c0_31] : memref<1x128xf32, #tpu.memory_space<vmem>>, vector<1x128xf32>
    %56 = vector.broadcast %45 : vector<1x1xf32> to vector<1x128xf32>
    %57 = arith.mulf %56, %55 : vector<1x128xf32>
    %cst_32 = arith.constant dense<0.000000e+00> : vector<1x128xf32>
    %58 = tpu.matmul %48, %19, %cst_32 {dimension_numbers = #tpu.dot_dimension_numbers<[1], [0], [0], [1], [0, 0, 1, 1], [], []>} : vector<1x128xf32>, vector<128x128xf32>, vector<1x128xf32> -> vector<1x128xf32>
    %59 = arith.addf %57, %58 : vector<1x128xf32>
    %c0_33 = arith.constant 0 : index
    %c0_34 = arith.constant 0 : index
    %60 = vector.load %arg14[%c0_33, %c0_34] : memref<1x128xf32, #tpu.memory_space<vmem>>, vector<1x128xf32>
    tpu.vector_store %arg14[%c0_33, %c0_34], %59 {strides = array<i32>} : memref<1x128xf32, #tpu.memory_space<vmem>>, vector<1x128xf32>,
    %c0_35 = arith.constant 0 : index
    %c0_36 = arith.constant 0 : index
    %61 = vector.load %arg12[%c0_35, %c0_36] : memref<1x1xf32, #tpu.memory_space<vmem>>, vector<1x1xf32>
    tpu.vector_store %arg12[%c0_35, %c0_36], %43 {strides = array<i32>} : memref<1x1xf32, #tpu.memory_space<vmem>>, vector<1x1xf32>,
    %c0_37 = arith.constant 0 : index
    %c0_38 = arith.constant 0 : index
    %c0_39 = arith.constant 0 : index
    %c0_40 = arith.constant 0 : index
    %62 = vector.load %arg10[%c0_37, %c0_38, %c0_39, %c0_40] : memref<1x1x1x128xf32, #tpu.memory_space<vmem>>, vector<1x1x1x128xf32>
    %63 = vector.shape_cast %62 : vector<1x1x1x128xf32> to vector<1x128xf32>
    %64 = vector.shape_cast %39 : vector<1x128xf32> to vector<1x1x1x128xf32>
    tpu.vector_store %arg10[%c0_37, %c0_38, %c0_39, %c0_40], %64 {strides = array<i32>} : memref<1x1x1x128xf32, #tpu.memory_space<vmem>>, vector<1x1x1x128xf32>,
    %c1_i32 = arith.constant 1 : i32
    %65 = arith.cmpi eq, %arg1, %c1_i32 : i32
    %66 = arith.extui %65 : i1 to i32
    %c0_i32_41 = arith.constant 0 : i32
    %67 = arith.cmpi ne, %66, %c0_i32_41 : i32
    scf.if %67 {
      %c0_42 = arith.constant 0 : index
      %c0_43 = arith.constant 0 : index
      %68 = vector.load %arg14[%c0_42, %c0_43] : memref<1x128xf32, #tpu.memory_space<vmem>>, vector<1x128xf32>
      %c0_44 = arith.constant 0 : index
      %c0_45 = arith.constant 0 : index
      %69 = vector.load %arg13[%c0_44, %c0_45] : memref<1x1xf32, #tpu.memory_space<vmem>>, vector<1x1xf32>
      %70 = vector.broadcast %69 : vector<1x1xf32> to vector<1x128xf32>
      %71 = arith.divf %68, %70 : vector<1x128xf32>
      %c0_46 = arith.constant 0 : index
      %c0_47 = arith.constant 0 : index
      %c0_48 = arith.constant 0 : index
      %72 = vector.load %arg11[%c0_46, %c0_47, %c0_48] : memref<1x1x128xf32, #tpu.memory_space<vmem>>, vector<1x1x128xf32>
      %73 = vector.shape_cast %72 : vector<1x1x128xf32> to vector<1x128xf32>
      %74 = vector.shape_cast %71 : vector<1x128xf32> to vector<1x1x128xf32>
      tpu.vector_store %arg11[%c0_46, %c0_47, %c0_48], %74 {strides = array<i32>} : memref<1x1x128xf32, #tpu.memory_space<vmem>>, vector<1x1x128xf32>,
    } else {
    }
    return
  }
  func.func @transform_0(%arg0: i32, %arg1: i32) -> i32 {
    %c0_i32 = arith.constant 0 : i32
    %c0_i32_0 = arith.constant 0 : i32
    return %c0_i32 : i32
  }
  func.func @transform_1(%arg0: i32, %arg1: i32) -> i32 {
    %c0_i32 = arith.constant 0 : i32
    %c0_i32_0 = arith.constant 0 : i32
    return %c0_i32 : i32
  }
  func.func @transform_2(%arg0: i32, %arg1: i32) -> (i32, i32, i32) {
    %c0_i32 = arith.constant 0 : i32
    %c0_i32_0 = arith.constant 0 : i32
    return %arg0, %arg1, %c0_i32 : i32, i32, i32
  }
  func.func @transform_3(%arg0: i32, %arg1: i32) -> (i32, i32, i32) {
    %c0_i32 = arith.constant 0 : i32
    %c0_i32_0 = arith.constant 0 : i32
    %c0_i32_1 = arith.constant 0 : i32
    return %arg0, %c0_i32, %c0_i32_0 : i32, i32, i32
  }
  func.func @transform_4(%arg0: i32, %arg1: i32) -> (i32, i32, i32) {
    %c0_i32 = arith.constant 0 : i32
    %c0_i32_0 = arith.constant 0 : i32
    %c0_i32_1 = arith.constant 0 : i32
    return %arg0, %c0_i32, %c0_i32_0 : i32, i32, i32
  }
  func.func @transform_5(%arg0: i32, %arg1: i32) -> (i32, i32, i32) {
    %c0_i32 = arith.constant 0 : i32
    %c0_i32_0 = arith.constant 0 : i32
    %c0_i32_1 = arith.constant 0 : i32
    return %arg0, %c0_i32, %c0_i32_0 : i32, i32, i32
  }
  func.func @transform_6(%arg0: i32, %arg1: i32) -> (i32, i32, i32) {
    %c0_i32 = arith.constant 0 : i32
    %c0_i32_0 = arith.constant 0 : i32
    %c0_i32_1 = arith.constant 0 : i32
    return %arg0, %c0_i32, %c0_i32_0 : i32, i32, i32
  }
  func.func @transform_7(%arg0: i32, %arg1: i32) -> (i32, i32, i32) {
    %c0_i32 = arith.constant 0 : i32
    %c0_i32_0 = arith.constant 0 : i32
    %c0_i32_1 = arith.constant 0 : i32
    return %arg0, %c0_i32, %c0_i32_0 : i32, i32, i32
  }
  func.func @transform_8(%arg0: i32, %arg1: i32) -> (i32, i32, i32, i32) {
    %c0_i32 = arith.constant 0 : i32
    %c0_i32_0 = arith.constant 0 : i32
    %c0_i32_1 = arith.constant 0 : i32
    return %arg0, %arg1, %c0_i32, %c0_i32_0 : i32, i32, i32, i32
  }
  func.func @transform_9(%arg0: i32, %arg1: i32) -> (i32, i32, i32) {
    %c0_i32 = arith.constant 0 : i32
    %c0_i32_0 = arith.constant 0 : i32
    %c0_i32_1 = arith.constant 0 : i32
    return %arg0, %c0_i32, %c0_i32_0 : i32, i32, i32
  }
}

</mosaic_0001>

<bundles_post_ra>
// kernel: tpu_custom_call.1
= control target key start
LH: loop header
LB: loop body
LE: loop exit
PB: predicated region body
PF: predicated region fallthrough
CT: control target
= control target key end

     0   :  { %s2955_s0 = inlined_call_operand.hbm [shape: s32[2], index: 0, kind: input, shape index: {}]   ;;  %s2956_s1 = inlined_call_operand.vmem [shape: f32[2], index: 1, kind: input, shape index: {}]   ;;  %s2957_s2 = inlined_call_operand.hbm [shape: bf16[2,256,256], index: 2, kind: input, shape index: {}]   ;;  %s2958_s3 = inlined_call_operand.hbm [shape: bf16[2,256,128], index: 3, kind: input, shape index: {}]   ;;  %s2959_s4 = inlined_call_operand.vmem [shape: f32[2,1,128], index: 4, kind: input, shape index: {}]   ;;  %s2960_s5 = inlined_call_operand.hbm [shape: bf16[2,128,128], index: 5, kind: input, shape index: {}]   ;;  %s2961_s6 = inlined_call_operand.vmem [shape: f32[2,1,128], index: 6, kind: input, shape index: {}]   ;;  %s2962_s7 = inlined_call_operand.vmem [shape: f32[2,1,128], index: 7, kind: input, shape index: {}]   ;;  %s2963_s8 = inlined_call_operand.hbm [shape: f32[2,2,1,128], index: 8, kind: output, shape index: {0}]   ;;  %s2964_s9 = inlined_call_operand.hbm [shape: f32[2,1,128], index: 9, kind: output, shape index: {1}]  }
   0x1   :  { %2996 = sst [smem:[#allocation38_spill]] %s2955_s0 }
   0x2   :  { %2997 = sst [smem:[#allocation39_spill]] %s2956_s1 }
   0x3   :  { %2998 = sst [smem:[#allocation40_spill]] %s2958_s3 }
   0x4   :  { %2999 = sst [smem:[#allocation41_spill]] %s2959_s4 }
   0x5   :  { %3000 = sst [smem:[#allocation42_spill]] %s2961_s6 }
   0x6   :  { %3001 = sst [smem:[#allocation43_spill]] %s2962_s7 }
   0x7   :  { %3002 = sst [smem:[#allocation44_spill]] %s2963_s8 }
   0x8   :  { %3003 = sst [smem:[#allocation45_spill]] %s2964_s9 }
   0x9   :  { %15 = vsyncpa [#allocation8], 0 }
   0xa   :  { %16 = vsyncpa [#allocation9], 0 }
   0xb   :  { %17 = vsyncpa [#allocation6], 0 }
   0xc   :  { %19 = vsyncpa [#allocation6 + $0x1], 0 }
   0xd   :  { %20 = vsyncpa [#allocation13], 0 }
   0xe   :  { %22 = vsyncpa [#allocation13 + $0x1], 0 }
   0xf   :  { %23 = vsyncpa [#allocation7], 0 }
  0x10   :  { %25 = vsyncpa [#allocation7 + $0x1], 0 }
  0x11   :  { %26 = vsyncpa [#allocation17], 0 }
  0x12   :  { %28 = vsyncpa [#allocation17 + $0x1], 0  ;;  %s2389_s30 = smov 0   ;;  %s2391_s10 = smov 0  }
  0x13   :  { %s2393_s11 = smov 0   ;;  %s2395_s12 = smov 0  }
  0x14   :  { %s2397_s13 = smov 0   ;;  %s2399_s14 = smov 0  }
  0x15   :  { %s2401_s15 = smov 0   ;;  %s2403_s16 = smov 0  }
  0x16   :  { %s2405_s17 = smov 0   ;;  %s2407_s18 = smov 0  }
  0x17   :  { %s2409_s19 = smov 0  }
  0x18 LB: > { %3004 = sst [smem:[#allocation24_spill]] %s2280_s30  ;;  %p2970_p0 = scmp.eq.s32.totalorder %s2320_s19, 0  ;;  %s2320_s19 = sphi %s2409_s19, %s34_s19   ;;  %s2316_s18 = sphi %s2407_s18, %s3085_s18   ;;  %s2312_s17 = sphi %s2405_s17, %s3084_s17   ;;  %s2308_s16 = sphi %s2403_s16, %s3083_s16   ;;  %s2304_s15 = sphi %s2401_s15, %s3075_s15   ;;  %s2300_s14 = sphi %s2399_s14, %s3082_s14   ;;  %s2296_s13 = sphi %s2397_s13, %s3081_s13   ;;  %s2292_s12 = sphi %s2395_s12, %s3074_s12   ;;  %s2288_s11 = sphi %s2393_s11, %s3080_s11   ;;  %s2284_s10 = sphi %s2391_s10, %s3079_s10   ;;  %s2280_s30 = sphi %s2389_s30, %s3078_s30  }
  0x19   : > { %3005 = sst [smem:[#allocation25_spill]] %s2284_s10  ;;  %p130_p1 = scmp.ne.s32.totalorder %s2288_s11, %s2284_s10 }
  0x1a   : > { %3006 = sst [smem:[#allocation26_spill]] %s2292_s12  ;;  %p2969_p2 = scmp.lt.s32.totalorder %s2320_s19, 4 }
  0x1b   : > { %3007 = sst [smem:[#allocation27_spill]] %s2296_s13  ;;  %s362_s21 = sand.u32 1, %s2320_s19  }
  0x1c   : > { %3008 = sst [smem:[#allocation28_spill]] %s2304_s15  ;;  %p132_p3 = por %p130_p1, %p2970_p0 }
  0x1d   : > { %3009 = sst [smem:[#allocation29_spill]] %s2308_s16  ;;  %s364_s22 = sand.u32 1, %s2288_s11  }
  0x1e   : > { %3010 = sst [smem:[#allocation30_spill]] %s2312_s17  ;;  %s1593_s23 = sshll.u32 %s2316_s18, 11 }
  0x1f   : > { %s1530_s24 = sshll.u32 %s364_s22, 7  ;;  %s3011_s3 = sld [smem:[#allocation40_spill]] }
  0x20   : > { %p2462_p4 = pnand %p2969_p2, %p132_p3  ;;  %s366_s29 = scalar_lea.vmem [#allocation12], %s1530_s24 }
  0x21   : > { %s373_s20 = sshll.u32 %s366_s29, 4  ;;  %s1533_s9 = sshll.u32 %s364_s22, 6  ;;  %s374_s20 = int_to_ptr.vmem [resolvable:$true] %s373_s20 }
  0x22   : > { %s2466_s8 = scalar_lea.sflag [#allocation13], %s362_s21  ;;  %p2968_p5 = pneg %p2462_p4 }
  0x23   : > { %s2061_s15 = scalar_lea.vmem %s374_s20, 2048 }
  0x24   : > { %p2062_p6 = scmp.ne.s32.totalorder %s374_s20, %s2061_s15 }
  0x25   : > { %s372_s27 = scalar_lea.hbm %s3011_s3, %s1593_s23  ;;  %s2322_s23 = smov [#allocation12]  }
  0x26   : > { %p2064_p7 = pnand %p2062_p6, %p2968_p5  ;;  %s2066_s25 = sshll.u32 %s2322_s23, 4  ;;  %s2067_s25 = int_to_ptr.vmem [resolvable:$false] %s2066_s25 }
  0x27   : > { %s2068_s26 = scalar_lea.vmem %s2067_s25, 4096  ;;  %p2069_p9 = scmp.lt.s32.totalorder %s374_s20, %s2067_s25 }
  0x28   : > { %p2065_p8 = pneg %p2064_p7  ;;  %p2070_p10 = scmp.lt.s32.totalorder %s2068_s26, %s2061_s15 }
  0x2a   : > { %p2071_p11 = por %p2070_p10, %p2069_p9 }
  0x2c   : > { %p2072_p12 = pnand %p2071_p11, %p2065_p8 }
  0x2e   : > { %2075 = shalt.err (!%p2072_p12)
}
  0x2f   : > { %s2972_s22 = smov 64   ;;  %s2973_s21 = smov 4  }
  0x30   : > { %1842 = dma.hbm_to_vmem [thread:$0]  (!%p2462_p4), %s372_s27, 2048, %s374_s20, %s2466_s8, %s2972_s22, %s2972_s22, %s2973_s21  }
  0x31   : > { %s393_s15 = scalar_lea.vmem [#allocation14], %s1533_s9  ;;  %s2482_s29 = sadd.s32 4294967295, %s2320_s19  }
  0x32   : > { %s2479_s24 = sshll.u32 %s393_s15, 4  ;;  %s1520_s23 = sadd.s32 4294967294, %s2320_s19   ;;  %s401_s24 = int_to_ptr.vmem [resolvable:$true] %s2479_s24 }
  0x33   : > { %p110_p13 = scmp.ne.s32.totalorder %s2296_s13, %s2292_s12  ;;  %p2971_p3 = scmp.eq.s32.totalorder %s2482_s29, 0 }
  0x34   : > { %p136_p6 = scmp.ne.s32.totalorder %s2284_s10, %s2280_s30  ;;  %p2974_p7 = scmp.eq.s32.totalorder %s2482_s29, 3 }
  0x35   : > { %p2493_p8 = por %p2971_p3, %p110_p13  ;;  %p272_p9 = scmp.eq.s32.totalorder %s1520_s23, 3 }
  0x36   : > { %p2499_p10 = por %p136_p6, %p2971_p3  ;;  %p2508_p11 = por %p2974_p7, %p130_p1 }
  0x37   : > { %s3013_s9 = scalar_select %p2493_p8, 1, 0 }
  0x38   : > { %s3015_s20 = scalar_select %p2499_p10, 1, 0 }
  0x39   : > { %3014 = sst [smem:[#allocation31_spill]] %s3013_s9  ;;  %p2512_p12 = por %p272_p9, %p110_p13 }
  0x3a   : > { %3016 = sst [smem:[#allocation32_spill]] %s3015_s20  ;;  %p2516_p5 = por %p272_p9, %p136_p6 }
  0x3b   : > { %s3017_s27 = scalar_select %p2508_p11, 1, 0 }
  0x3c   : > { %s3019_s25 = scalar_select %p2512_p12, 1, 0 }
  0x3d   : > { %3018 = sst [smem:[#allocation33_spill]] %s3017_s27  ;;  %p1521_p2 = scmp.ge.s32.totalorder %s2320_s19, 1 }
  0x3e   : > { %3020 = sst [smem:[#allocation34_spill]] %s3019_s25  ;;  %p305_p0 = scmp.lt.s32.totalorder %s2320_s19, 5 }
  0x3f   : > { %s3021_s26 = scalar_select %p2516_p5, 1, 0 }
  0x40   : > { %p2522_p3 = pnand %p1521_p2, %p305_p0  ;;  %s3024_s1 = sld [smem:[#allocation39_spill]] }
  0x41   : > { %3022 = sst [smem:[#allocation35_spill]] %s3021_s26  ;;  %p3025_p13 = scmp.eq.s32.totalorder %s2482_s29, 0 }
  0x42   : > { %p1829_p1 = pneg %p2522_p3  ;;  %s43_s26 = sadd.s32 1, %s2312_s17 }
  0x43   : > { %s46_s30 = sadd.s32 1, %s2316_s18  ;;  %p2539_p0 = scmp.ge.s32.totalorder %s43_s26, 2 }
  0x44   : > { %p2533_p7 = pnand %p1829_p1, %p3025_p13  ;;  %s2325_s12 = smov [#allocation5]  }
  0x45   : > { %s3028_s0 = sld [smem:[#allocation38_spill]] }
  0x46   : > { %s327_s21 = sshll.u32 %s3024_s1, 4  ;;  %p2089_p6 = pneg %p2533_p7  ;;  %s328_s21 = int_to_ptr.vmem [resolvable:$true] %s327_s21 }
  0x47   : > { %s2087_s1 = scalar_lea.vmem %s328_s21, 16  ;;  %p2095_p13 = scmp.lt.s32.totalorder %s328_s21, %s328_s21 }
  0x48   : > { %p2088_p2 = scmp.ne.s32.totalorder %s328_s21, %s2087_s1  ;;  %p2096_p5 = scmp.lt.s32.totalorder %s2087_s1, %s2087_s1 }
  0x4a   : > { %p2090_p9 = pnand %p2089_p6, %p2088_p2  ;;  %p2097_p12 = por %p2096_p5, %p2095_p13 }
  0x4b   : > { %1832 = dma.hbm_to_smem (!%p2533_p7), %s3028_s0, 16, %s2325_s12, [#allocation8]  }
  0x4c   : > { %p2091_p1 = pneg %p2090_p9 }
  0x4e   : > { %p2098_p11 = pnand %p2097_p12, %p2091_p1 }
  0x50   : > { %2101 = shalt.err (!%p2098_p11)
}
  0x51   : > { %s2326_s27 = smov [#allocation10]   ;;  %s3087_s26 = smov (%p2539_p0, %s43_s26), 0 }
  0x52   : > { %1835 = dma.vmem_to_smem (!%p2533_p7), %s328_s21, 16, %s2326_s27, [#allocation9]  }
  0x53   : > { %3029 = sst [smem:[#allocation36_spill]] %s3087_s26  ;;  %s3089_s30 = smov (!%p2539_p0, %s46_s30), %s2316_s18 }
  0x54   : > { %s93_s1 = ssub.s32 %s2312_s17, %s3087_s26  ;;  %s97_s3 = sadd.s32 1, %s2300_s14 }
  0x55   : > { %p48_p5 = scmp.ge.s32.totalorder %s3089_s30, 2  ;;  %p104_p11 = scmp.ne.s32.totalorder %s2300_s14, %s2296_s13 }
  0x56   : > { %s338_s12 = sand.u32 1, %s2300_s14   ;;  %s1592_s22 = sshll.u32 %s2312_s17, 5 }
  0x57   : > { %s3091_s30 = smov (%p48_p5, %s3089_s30), 0  ;;  %p3030_p12 = scmp.eq.s32.totalorder %s2320_s19, 0 }
  0x58   : > { %p3032_p2 = scmp.eq.s32.totalorder %s2482_s29, 3  ;;  %s92_s25 = ssub.s32 %s2316_s18, %s3091_s30 }
  0x59   : > { %p2570_p7 = por %p3030_p12, %p104_p11  ;;  %s94_s23 = sor.u32 %s93_s1, %s92_s25 }
  0x5a   : > { %p2576_p0 = por %p3032_p2, %p104_p11  ;;  %p121_p6 = scmp.eq.s32.totalorder %s92_s25, 0 }
  0x5b   : > { %p95_p9 = scmp.eq.s32.totalorder %s94_s23, 0  ;;  %s1525_s0 = sshll.u32 %s338_s12, 7 }
  0x5c   : > { %s3033_s27 = scalar_select %p2576_p0, 1, 0 }
  0x5d   : > { %s3035_s26 = sadd.s32 1, %s2288_s11  ;;  %s1528_s6 = sshll.u32 %s2316_s18, 6 }
  0x5e   : > { %3034 = sst [smem:[#allocation37_spill]] %s3033_s27  ;;  %s349_s4 = sadd.s32 %s1592_s22, %s1528_s6 }
  0x5f   : > { %s2585_s17 = scalar_select %p121_p6, %s2288_s11, %s3035_s26  }
  0x60   : > { %s2588_s7 = scalar_select %p95_p9, %s2300_s14, %s97_s3  }
  0x61   : > { %s342_s16 = scalar_lea.vmem [#allocation11], %s1525_s0  ;;  %s1529_s10 = sshll.u32 %s349_s4, 6 }
  0x62   : > { %s352_s20 = sshll.u32 %s342_s16, 4  ;;  %s351_s27 = scalar_lea.hbm %s2957_s2, %s1529_s10  ;;  %s353_s20 = int_to_ptr.vmem [resolvable:$true] %s352_s20 }
  0x63   : > { %p3036_p1 = scmp.lt.s32.totalorder %s2320_s19, 4  ;;  %s1594_s26 = sshll.u32 %s2316_s18, 10 }
  0x64   : > { %s339_s3 = scalar_lea.sflag [#allocation6], %s338_s12  ;;  %s2115_s6 = scalar_lea.vmem %s353_s20, 2048 }
  0x65   : > { %p2598_p13 = pnand %p3036_p1, %p2570_p7  ;;  %p2116_p11 = scmp.ne.s32.totalorder %s353_s20, %s2115_s6 }
  0x66   : > { %s2327_s0 = smov [#allocation11]  }
  0x67   : > { %p2104_p5 = pneg %p2598_p13  ;;  %s2120_s4 = sshll.u32 %s2327_s0, 4  ;;  %s2121_s4 = int_to_ptr.vmem [resolvable:$false] %s2120_s4 }
  0x68   : > { %s2122_s13 = scalar_lea.vmem %s2121_s4, 4096  ;;  %p2123_p6 = scmp.lt.s32.totalorder %s353_s20, %s2121_s4 }
  0x69   : > { %p2118_p12 = pnand %p2116_p11, %p2104_p5  ;;  %p2124_p9 = scmp.lt.s32.totalorder %s2122_s13, %s2115_s6 }
  0x6b   : > { %p2119_p2 = pneg %p2118_p12  ;;  %p2125_p0 = por %p2124_p9, %p2123_p6 }
  0x6d   : > { %p2126_p7 = pnand %p2125_p0, %p2119_p2 }
  0x6f   : > { %2129 = shalt.err (!%p2126_p7)
}
  0x70   : > { %s2328_s10 = smov 128   ;;  %s2329_s16 = smov 8  }
  0x71   : > { %1839 = dma.hbm_to_vmem [thread:$0]  (!%p2598_p13), %s351_s27, 2048, %s353_s20, %s339_s3, %s2328_s10, %s2328_s10, %s2329_s16  }
  0x72   : > { %s399_s22 = scalar_lea.hbm %s2960_s5, %s1594_s26  ;;  %s2143_s21 = scalar_lea.vmem %s401_s24, 1024 }
  0x73   : > { %p2144_p1 = scmp.ne.s32.totalorder %s401_s24, %s2143_s21  ;;  %p3038_p5 = pneg %p2462_p4 }
  0x74   : > { %s2330_s25 = smov [#allocation14]  }
  0x75   : > { %p2146_p11 = pnand %p2144_p1, %p3038_p5  ;;  %s2148_s23 = sshll.u32 %s2330_s25, 4  ;;  %s2149_s23 = int_to_ptr.vmem [resolvable:$false] %s2148_s23 }
  0x76   : > { %s2150_s6 = scalar_lea.vmem %s2149_s23, 2048  ;;  %p2151_p0 = scmp.lt.s32.totalorder %s401_s24, %s2149_s23 }
  0x77   : > { %p2147_p12 = pneg %p2146_p11  ;;  %p2152_p2 = scmp.lt.s32.totalorder %s2150_s6, %s2143_s21 }
  0x79   : > { %p2153_p6 = por %p2152_p2, %p2151_p0 }
  0x7b   : > { %p2154_p9 = pnand %p2153_p6, %p2147_p12 }
  0x7d   : > { %2157 = shalt.err (!%p2154_p9)
}
  0x7e   : > { %s3039_s20 = smov 4   ;;  %s3040_s27 = smov 64  }
  0x7f   : > { %1845 = dma.hbm_to_vmem [thread:$0]  (!%p2462_p4), %s399_s22, 1024, %s401_s24, %s2466_s8, %s3040_s27, %s3040_s27, %s3039_s20  }
  0x80   : > { %424 = sbr.rel (%p2522_p3) target bundleno = 1628 (0x65c), region = 52  ;;  %p3041_p13 = scmp.eq.s32.totalorder (!%p2522_p3), %s2482_s29, 0 }
  0x85   : > { %2255 = dma.done.wait (%p3041_p13), [#allocation8], 16   ;;  %p3042_p7 = pmov %p3041_p13 }
  0x87   : > { %2257 = vsyncadd (%p3042_p7), [#allocation8], 4294967280  ;;  %p3043_p1 = pmov %p3042_p7 }
  0x89   : > { %2259 = dma.done.wait (%p3043_p1), [#allocation9], 16   ;;  %p3044_p5 = pmov %p3043_p1 }
  0x8a   : > { %s3045_s28 = sld [smem:[#allocation27_spill]] }
  0x8b   : > { %2261 = vsyncadd (%p3044_p5), [#allocation9], 4294967280 }
  0x90   : > { %s2631_s26 = sand.u32 1, %s3045_s28  }
  0x91   : > { %s1539_s8 = sshll.u32 %s2631_s26, 7  ;;  %s435_s24 = scalar_lea.sflag [#allocation6], %s2631_s26 }
  0x92   : > { %s2635_s15 = scalar_lea.vmem [#allocation11], %s1539_s8 }
  0x93   : > { %2263 = dma.done.wait (%p2493_p8), %s435_s24, 2048  }
  0x94   : > { %2265 = vsyncadd (%p2493_p8), %s435_s24, 4294965248  ;;  %s3047_s3 = sld [smem:[#allocation25_spill]]  ;;  %s443_s4 = sand.u32 1, %s2482_s29  }
  0x95   : > { %s444_s16 = scalar_lea.sflag [#allocation13], %s443_s4 }
  0x9a   : > { %s2643_s13 = sand.u32 1, %s3047_s3  }
  0x9b   : > { %s1540_s10 = sshll.u32 %s2643_s13, 7 }
  0x9c   : > { %s2646_s9 = scalar_lea.vmem [#allocation12], %s1540_s10 }
  0x9d   : > { %2267 = dma.done.wait (%p2499_p10), %s444_s16, 3072  }
  0x9e   : > { %2269 = vsyncadd (%p2499_p10), %s444_s16, 4294964224  ;;  %s1541_s12 = sshll.u32 %s2643_s13, 6 }
  0x9f   : > { %s2653_s22 = scalar_lea.vmem [#allocation14], %s1541_s12 }
  0xa0   : > { %461 = sfence }
  0xa1   : > { %s3049_s21 = sld [smem:[#allocation29_spill]]  ;;  %s507_s4 = scalar_lea.vmem [#allocation15], %s2631_s26 }
  0xa2   : > { %s3050_s23 = sld [smem:[#allocation41_spill]]  ;;  %s513_s10 = scalar_lea.vmem [#allocation16], %s2643_s13 }
  0xa3   : > { %s3051_s28 = sld [smem:[#allocation42_spill]] }
  0xa4   : > { %s3052_s3 = sld [smem:[#allocation43_spill]] }
  0xa5   : > { %s3053_s16 = sld [smem:[#allocation28_spill]] }
  0xa7   : > { %p515_p4 = scmp.lt.s32.totalorder %s3049_s21, 1 }
  0xa9   : > { %s3093_s21 = smov (!%p515_p4, %s3049_s21), 1 }
  0xaa   : > { %s517_s6 = scalar_lea.vmem %s3050_s23, %s3093_s21  ;;  %s520_s1 = scalar_lea.vmem %s3051_s28, %s3093_s21 }
  0xab   : > { %s523_s0 = scalar_lea.vmem %s3052_s3, %s3093_s21  ;;  %p1542_p3 = scmp.ne.s32.totalorder %s3053_s16, 0 }
  0xad   : > { %528 = sbr.rel (%p1542_p3) target bundleno = 181 (0xb5), region = 76 }
  0xb2   : > { %vm529_vm0 = vcmask 0   ;;  %v2331_v0 = vmov -1e+30   ;;  %v2332_v1 = vmov 0.0  }
  0xb3   : > { %530 = vst.msk [vmem:[#allocation2] sm:$0x1] %vm529_vm0, %v2331_v0  ;;  %531 = vst.msk [vmem:[#allocation3] sm:$0x1] %vm529_vm0, %v2332_v1 }
  0xb4   : > { %532 = vst [vmem:[#allocation4] sm:$0x1] %v2332_v1 }
  0xb5 PF: > { %v1961_v2 = vld [vmem:[%s2646_s9 + $0x78] sm:$0xff]   ;;  %v1963_v4 = vld [vmem:[%s2646_s9 + $0x70] sm:$0xff]   ;;  %v1965_v6 = vld [vmem:[%s2646_s9 + $0x68] sm:$0xff]   ;;  %v2333_v42 = vmov 0.0   ;;  %vm2334_vm1 = vmmov 0   ;;  %s3056_s23 = sld [smem:[#allocation29_spill]] }
  0xb6   : > { %v1962_v3 = vld [vmem:[%s2646_s9 + $0x38] sm:$0xff]   ;;  %1595 = vmatprep.subr.bf16.mxu0 %v1961_v2  ;;  %v1964_v5 = vld [vmem:[%s2646_s9 + $0x30] sm:$0xff]   ;;  %v1966_v7 = vld [vmem:[%s2646_s9 + $0x28] sm:$0xff]   ;;  %vm1152_vm3 = vcmask 1040384   ;;  %vm1178_vm4 = vcmask 0  }
  0xb7   : > { %1596 = vmatpush3.bf16.msra.mxu0 %v1962_v3  ;;  %v1967_v8 = vld [vmem:[%s2646_s9 + $0x60] sm:$0xff]   ;;  %v1969_v10 = vld [vmem:[%s2646_s9 + $0x58] sm:$0xff]   ;;  %v1971_v12 = vld [vmem:[%s2646_s9 + $0x50] sm:$0xff]  }
  0xb8   : > { %1597 = vmatprep.subr.bf16.mxu0 %v1963_v4  ;;  %v1968_v9 = vld [vmem:[%s2646_s9 + $0x20] sm:$0xff]   ;;  %v1970_v11 = vld [vmem:[%s2646_s9 + $0x18] sm:$0xff]   ;;  %v1972_v14 = vld [vmem:[%s2646_s9 + $0x10] sm:$0xff]  }
  0xb9   : > { %v1979_v13 = vld [vmem:[%s2635_s15 + $0x4] ss:$8 sps:$4 sm:$0xff]   ;;  %v2001_v19 = vld [vmem:[%s2653_s22 + $0x38] sm:$0xff]   ;;  %v1977_v20 = vld [vmem:[%s2635_s15] ss:$8 sps:$4 sm:$0xff]  }
  0xba   : > { %814 = vmatprep.mubr.bf16.mxu0 %v1979_v13  ;;  %v1973_v15 = vld [vmem:[%s2646_s9 + $0x48] sm:$0xff]   ;;  %v1975_v17 = vld [vmem:[%s2646_s9 + $0x40] sm:$0xff]   ;;  %v2002_v21 = vld [vmem:[%s2653_s22 + $0x30] sm:$0xff]   ;;  %1709 = vmatprep.subr.bf16.mxu1 %v2001_v19 }
  0xbb   : > { %1598 = vmatpush3.bf16.msra.mxu0 %v1964_v5  ;;  %v1974_v16 = vld [vmem:[%s2646_s9 + $0x8] sm:$0xff]   ;;  %v1976_v18 = vld [vmem:[%s2646_s9] sm:$0xff]   ;;  %v1980_v22 = vld [vmem:[%s2635_s15 + $0x14] ss:$8 sps:$4 sm:$0xff]   ;;  %1710 = vmatpush3.bf16.msra.mxu1 %v2001_v19  ;;  %s1070_s8 = sld [smem:[#allocation10 + %s3056_s23]] }
  0xbc   : > { %1599 = vmatprep.subr.bf16.mxu0 %v1965_v6  ;;  %v2003_v23 = vld [vmem:[%s2653_s22 + $0x28] sm:$0xff]   ;;  %1711 = vmatprep.subr.bf16.mxu1 %v2002_v21  ;;  %v1982_v24 = vld [vmem:[%s2635_s15 + $0x10] ss:$8 sps:$4 sm:$0xff]   ;;  %v1986_v27 = vld [vmem:[%s2635_s15 + $0x34] ss:$8 sps:$4 sm:$0xff]  }
  0xbd   : > { %v1983_v25 = vld [vmem:[%s2635_s15 + $0x24] ss:$8 sps:$4 sm:$0xff]   ;;  %v1985_v26 = vld [vmem:[%s2635_s15 + $0x20] ss:$8 sps:$4 sm:$0xff]   ;;  %v1988_v28 = vld [vmem:[%s2635_s15 + $0x30] ss:$8 sps:$4 sm:$0xff]  }
  0xbe   : > { %v1989_v29 = vld [vmem:[%s2635_s15 + $0x44] ss:$8 sps:$4 sm:$0xff]   ;;  %v1991_v30 = vld [vmem:[%s2635_s15 + $0x40] ss:$8 sps:$4 sm:$0xff]   ;;  %v1992_v31 = vld [vmem:[%s2635_s15 + $0x54] ss:$8 sps:$4 sm:$0xff]  }
  0xbf   : > { %1600 = vmatpush3.bf16.msra.mxu0 %v1966_v7  ;;  %1712 = vmatpush3.bf16.msra.mxu1 %v2002_v21  ;;  %v1994_v32 = vld [vmem:[%s2635_s15 + $0x50] ss:$8 sps:$4 sm:$0xff]   ;;  %v1995_v33 = vld [vmem:[%s2635_s15 + $0x64] ss:$8 sps:$4 sm:$0xff]   ;;  %v1997_v34 = vld [vmem:[%s2635_s15 + $0x60] ss:$8 sps:$4 sm:$0xff]  }
  0xc0   : > { %1601 = vmatprep.subr.bf16.mxu0 %v1967_v8  ;;  %1713 = vmatprep.subr.bf16.mxu1 %v2003_v23  ;;  %v1998_v35 = vld [vmem:[%s2635_s15 + $0x74] ss:$8 sps:$4 sm:$0xff]   ;;  %v2000_v36 = vld [vmem:[%s2635_s15 + $0x70] ss:$8 sps:$4 sm:$0xff]   ;;  %v2004_v37 = vld [vmem:[%s2653_s22 + $0x20] sm:$0xff]  }
  0xc1   : > { %v2005_v38 = vld [vmem:[%s2653_s22 + $0x18] sm:$0xff]   ;;  %v2006_v39 = vld [vmem:[%s2653_s22 + $0x10] sm:$0xff]   ;;  %v2007_v40 = vld [vmem:[%s2653_s22 + $0x8] sm:$0xff]  }
  0xc2   : > { %v2008_v41 = vld [vmem:[%s2653_s22] sm:$0xff]   ;;  %v2721_v47 = vld [vmem:[%s517_s6] ss:$0 sm:$0xff]  ;;  %s3057_s6 = sld [smem:[#allocation28_spill]] }
  0xc3   : > { %1602 = vmatpush3.bf16.msra.mxu0 %v1968_v9  ;;  %1714 = vmatpush3.bf16.msra.mxu1 %v2003_v23 }
  0xc4   : > { %1603 = vmatprep.subr.bf16.mxu0 %v1969_v10  ;;  %1715 = vmatprep.subr.bf16.mxu1 %v2004_v37 }
  0xc7   : > { %1604 = vmatpush3.bf16.msra.mxu0 %v1970_v11  ;;  %1716 = vmatpush3.bf16.msra.mxu1 %v2004_v37 }
  0xc8   : > { %1605 = vmatprep.subr.bf16.mxu0 %v1971_v12  ;;  %1717 = vmatprep.subr.bf16.mxu1 %v2005_v38  ;;  %s1585_s24 = sshll.u32 %s3057_s6, 7  ;;  %p1586_p8 = scmp.ne.s32.totalorder %s3057_s6, 1 }
  0xcb   : > { %1606 = vmatpush3.bf16.msra.mxu0 %v1972_v14  ;;  %1718 = vmatpush3.bf16.msra.mxu1 %v2005_v38 }
  0xcc   : > { %1607 = vmatprep.subr.bf16.mxu0 %v1973_v15  ;;  %1719 = vmatprep.subr.bf16.mxu1 %v2006_v39 }
  0xcf   : > { %1608 = vmatpush3.bf16.msra.mxu0 %v1974_v16  ;;  %1720 = vmatpush3.bf16.msra.mxu1 %v2006_v39 }
  0xd0   : > { %1609 = vmatprep.subr.bf16.mxu0 %v1975_v17  ;;  %1721 = vmatprep.subr.bf16.mxu1 %v2007_v40 }
  0xd3   : > { %1610 = vmatpush3.bf16.msra.mxu0 %v1976_v18  ;;  %1722 = vmatpush3.bf16.msra.mxu1 %v2007_v40 }
  0xd4   : > { %1723 = vmatprep.subr.bf16.mxu1 %v2008_v41  ;;  %1741 = vmatprep.subr.mxu0 %v2333_v42 }
  0xd6   : > { %815 = vmatmul.mubr.bf16.vlgmr.msra.gmra.mxu0 %v1977_v20 }
  0xd7   : > { %822 = vmatprep.mubr.bf16.mxu0 %v1980_v22  ;;  %1724 = vmatpush3.bf16.msra.mxu1 %v2008_v41 }
  0xd8   : > { %1776 = vmatprep.subr.mxu1 %v2333_v42 }
  0xde   : > { %823 = vmatmul.mubr.bf16.gmra.mxu0 %v1982_v24 }
  0xdf   : > { %830 = vmatprep.mubr.bf16.mxu0 %v1983_v25 }
  0xe6   : > { %831 = vmatmul.mubr.bf16.gmra.mxu0 %v1985_v26 }
  0xe7   : > { %838 = vmatprep.mubr.bf16.mxu0 %v1986_v27 }
  0xee   : > { %839 = vmatmul.mubr.bf16.gmra.mxu0 %v1988_v28 }
  0xef   : > { %846 = vmatprep.mubr.bf16.mxu0 %v1989_v29 }
  0xf6   : > { %847 = vmatmul.mubr.bf16.gmra.mxu0 %v1991_v30 }
  0xf7   : > { %854 = vmatprep.mubr.bf16.mxu0 %v1992_v31 }
  0xfe   : > { %855 = vmatmul.mubr.bf16.gmra.mxu0 %v1994_v32 }
  0xff   : > { %862 = vmatprep.mubr.bf16.mxu0 %v1995_v33 }
 0x106   : > { %863 = vmatmul.mubr.bf16.gmra.mxu0 %v1997_v34 }
 0x107   : > { %870 = vmatprep.mubr.bf16.mxu0 %v1998_v35 }
 0x10e   : > { %871 = vmatmul.mubr.bf16.gmra.mxu0 %v2000_v36 }
 0x10f   : > { %1773 = vmatprep.mubr.msk.f32.mxu0 %vm2334_vm1, %v2333_v42 }
 0x196   : > { %v1611_v43 = vpop.f32.mrf.mxu0 }
 0x198   : > { %v1612_v44 = vpop.f32.mrf.mxu0 }
 0x199   : > { %v1613_v45 = vadd.f32 %v1612_v44, %v1611_v43 }
 0x19a   : > { %v1614_v46 = vpop.f32.mrf.mxu0 }
 0x19b   : > { %v2724_v50 = vadd.f32 %v1613_v45, %v2721_v47 }
 0x19c   : > { %v1615_v48 = vpop.f32.mrf.mxu0 }
 0x19d   : > { %v1616_v49 = vadd.f32 %v1615_v48, %v1614_v46  ;;  %v879_v55 = vmax.f32 %v2724_v50, 0.0 }
 0x19e   : > { %v1617_v51 = vpop.f32.mrf.mxu0 }
 0x19f   : > { %v2727_v52 = vadd.f32 %v1616_v49, %v2721_v47 }
 0x1a0   : > { %v1618_v53 = vpop.f32.mrf.mxu0 }
 0x1a1   : > { %v1619_v54 = vadd.f32 %v1618_v53, %v1617_v51  ;;  %v880_v56 = vmax.f32 %v2727_v52, 0.0 }
 0x1a2   : > { %v1620_v57 = vpop.f32.mrf.mxu0 }
 0x1a3   : > { %v895_v58 = vpack.c.bf16 %v880_v56, %v879_v55  ;;  %v2736_v60 = vadd.f32 %v1619_v54, %v2721_v47 }
 0x1a4   : > { %v1621_v59 = vpop.f32.mrf.mxu0 }
 0x1a5   : > { %v1622_v61 = vadd.f32 %v1621_v59, %v1620_v57  ;;  %1725 = vmatprep.mubr.bf16.mxu1 %v895_v58  ;;  %v881_v1 = vmax.f32 %v2736_v60, 0.0 }
 0x1a6   : > { %v1623_v62 = vpop.f32.mrf.mxu0 }
 0x1a7   : > { %v2739_v63 = vadd.f32 %v1622_v61, %v2721_v47 }
 0x1a8   : > { %v1624_v0 = vpop.f32.mrf.mxu0 }
 0x1a9   : > { %v882_v2 = vmax.f32 %v2739_v63, 0.0  ;;  %v1625_v3 = vadd.f32 %v1624_v0, %v1623_v62 }
 0x1aa   : > { %v1626_v4 = vpop.f32.mrf.mxu0 }
 0x1ab   : > { %v896_v5 = vpack.c.bf16 %v882_v2, %v881_v1  ;;  %v2748_v7 = vadd.f32 %v1625_v3, %v2721_v47 }
 0x1ac   : > { %v1627_v6 = vpop.f32.mrf.mxu0 }
 0x1ad   : > { %v1628_v8 = vadd.f32 %v1627_v6, %v1626_v4  ;;  %1726 = vmatmul.mubr.bf16.vlgmr.msra.gmra.mxu1 %v896_v5  ;;  %v883_v12 = vmax.f32 %v2748_v7, 0.0 }
 0x1ae   : > { %v1629_v9 = vpop.f32.mrf.mxu0 }
 0x1af   : > { %v2751_v10 = vadd.f32 %v1628_v8, %v2721_v47 }
 0x1b0   : > { %v1630_v11 = vpop.f32.mrf.mxu0 }
 0x1b1   : > { %v884_v13 = vmax.f32 %v2751_v10, 0.0  ;;  %v1631_v14 = vadd.f32 %v1630_v11, %v1629_v9 }
 0x1b2   : > { %v1632_v15 = vpop.f32.mrf.mxu0 }
 0x1b3   : > { %v897_v16 = vpack.c.bf16 %v884_v13, %v883_v12  ;;  %v2760_v18 = vadd.f32 %v1631_v14, %v2721_v47 }
 0x1b4   : > { %v1633_v17 = vpop.f32.mrf.mxu0 }
 0x1b5   : > { %v1634_v19 = vadd.f32 %v1633_v17, %v1632_v15  ;;  %1729 = vmatprep.mubr.bf16.mxu1 %v897_v16  ;;  %v885_v23 = vmax.f32 %v2760_v18, 0.0 }
 0x1b6   : > { %v1635_v20 = vpop.f32.mrf.mxu0 }
 0x1b7   : > { %v2763_v21 = vadd.f32 %v1634_v19, %v2721_v47  ;;  %v2823_v19 = vld [vmem:[%s520_s1] ss:$0 sm:$0xff]  ;;  %s1147_s1 = sld [smem:[#allocation5 + %s3056_s23]] }
 0x1b8   : > { %v1636_v22 = vpop.f32.mrf.mxu0 }
 0x1b9   : > { %v886_v24 = vmax.f32 %v2763_v21, 0.0  ;;  %v1637_v25 = vadd.f32 %v1636_v22, %v1635_v20 }
 0x1ba   : > { %v1638_v26 = vpop.f32.mrf.mxu0 }
 0x1bb   : > { %v898_v27 = vpack.c.bf16 %v886_v24, %v885_v23  ;;  %v849_v29 = vadd.f32 %v1637_v25, %v2721_v47 }
 0x1bc   : > { %v1639_v28 = vpop.f32.mrf.mxu0 }
 0x1bd   : > { %v1640_v30 = vadd.f32 %v1639_v28, %v1638_v26  ;;  %1730 = vmatmul.mubr.bf16.gmra.mxu1 %v898_v27  ;;  %v887_v34 = vmax.f32 %v849_v29, 0.0 }
 0x1be   : > { %v1641_v31 = vpop.f32.mrf.mxu0 }
 0x1bf   : > { %v852_v32 = vadd.f32 %v1640_v30, %v2721_v47 }
 0x1c0   : > { %v1642_v33 = vpop.f32.mrf.mxu0 }
 0x1c1   : > { %v888_v35 = vmax.f32 %v852_v32, 0.0  ;;  %v1643_v36 = vadd.f32 %v1642_v33, %v1641_v31 }
 0x1c2   : > { %v1644_v37 = vpop.f32.mrf.mxu0 }
 0x1c3   : > { %v899_v38 = vpack.c.bf16 %v888_v35, %v887_v34  ;;  %v857_v40 = vadd.f32 %v1643_v36, %v2721_v47 }
 0x1c4   : > { %v1645_v39 = vpop.f32.mrf.mxu0 }
 0x1c5   : > { %v1646_v41 = vadd.f32 %v1645_v39, %v1644_v37  ;;  %1733 = vmatprep.mubr.bf16.mxu1 %v899_v38  ;;  %v889_v46 = vmax.f32 %v857_v40, 0.0 }
 0x1c6   : > { %v1647_v43 = vpop.f32.mrf.mxu0 }
 0x1c7   : > { %v860_v44 = vadd.f32 %v1646_v41, %v2721_v47 }
 0x1c8   : > { %v1648_v45 = vpop.f32.mrf.mxu0 }
 0x1c9   : > { %v890_v48 = vmax.f32 %v860_v44, 0.0  ;;  %v1649_v49 = vadd.f32 %v1648_v45, %v1647_v43 }
 0x1ca   : > { %v1650_v51 = vpop.f32.mrf.mxu0 }
 0x1cb   : > { %v900_v53 = vpack.c.bf16 %v890_v48, %v889_v46  ;;  %v865_v57 = vadd.f32 %v1649_v49, %v2721_v47 }
 0x1cc   : > { %v1651_v54 = vpop.f32.mrf.mxu0 }
 0x1cd   : > { %v1652_v58 = vadd.f32 %v1651_v54, %v1650_v51  ;;  %1734 = vmatmul.mubr.bf16.gmra.mxu1 %v900_v53  ;;  %v891_v0 = vmax.f32 %v865_v57, 0.0 }
 0x1ce   : > { %v1653_v59 = vpop.f32.mrf.mxu0 }
 0x1cf   : > { %v868_v61 = vadd.f32 %v1652_v58, %v2721_v47 }
 0x1d0   : > { %v1654_v62 = vpop.f32.mrf.mxu0 }
 0x1d1   : > { %v892_v3 = vmax.f32 %v868_v61, 0.0  ;;  %v1655_v4 = vadd.f32 %v1654_v62, %v1653_v59  ;;  %v599_v61 = vld [vmem:[%s523_s0] sm:$0x1]  ;;  %v1142_v62 = vlaneseq }
 0x1d2   : > { %v1656_v5 = vpop.f32.mrf.mxu0 }
 0x1d3   : > { %v901_v6 = vpack.c.bf16 %v892_v3, %v891_v0  ;;  %v873_v9 = vadd.f32 %v1655_v4, %v2721_v47 }
 0x1d4   : > { %v1657_v8 = vpop.f32.mrf.mxu0 }
 0x1d5   : > { %v1658_v11 = vadd.f32 %v1657_v8, %v1656_v5  ;;  %1737 = vmatprep.mubr.bf16.mxu1 %v901_v6  ;;  %v893_v15 = vmax.f32 %v873_v9, 0.0  ;;  %v1148_v5 = vstv %s1147_s1  ;;  %v1071_v6 = vstv %s1070_s8 }
 0x1d7   : > { %v876_v14 = vadd.f32 %v1658_v11, %v2721_v47 }
 0x1d9   : > { %v894_v16 = vmax.f32 %v876_v14, 0.0 }
 0x1db   : > { %1777 = vmatpush3.msra.mxu1 %v894_v16  ;;  %v902_v17 = vpack.c.bf16 %v894_v16, %v893_v15  ;;  %v1151_v16 = vld [vmem:[#allocation2] sm:$0x1] }
 0x1dc   : > { %1778 = vmatprep.subr.mxu1 %v2333_v42 }
 0x1dd   : > { %1738 = vmatmul.mubr.bf16.gmra.mxu1 %v902_v17 }
 0x1de   : > { %1779 = vmatpush3.msra.mxu1 %v893_v15  ;;  %1808 = vmatprep.mubr.msk.f32.mxu1 %vm2334_vm1, %v2333_v42  ;;  %v2335_v15 = vmov 0  }
 0x1df   : > { %1780 = vmatprep.subr.mxu1 %v2333_v42  ;;  %1959 = vset.pattern.permute.xlu0 %v2335_v15 }
 0x1e0   : > { %1781 = vmatpush3.msra.mxu1 %v892_v3  ;;  %v1145_v3 = vstv %s1585_s24  ;;  %1960 = vset.pattern.permute.xlu1 %v2335_v15 }
 0x1e1   : > { %1782 = vmatprep.subr.mxu1 %v2333_v42 }
 0x1e2   : > { %1783 = vmatpush3.msra.mxu1 %v891_v0  ;;  %v1143_v0 = vand.u32 127, %v1142_v62 }
 0x1e3   : > { %1784 = vmatprep.subr.mxu1 %v2333_v42 }
 0x1e4   : > { %1785 = vmatpush3.msra.mxu1 %v890_v48  ;;  %v1146_v4 = vadd.s32 %v1145_v3, %v1143_v0 }
 0x1e5   : > { %1786 = vmatprep.subr.mxu1 %v2333_v42 }
 0x1e6   : > { %1787 = vmatpush3.msra.mxu1 %v889_v46  ;;  %vm1149_vm2 = vcmp.lt.s32.totalorder %v1146_v4, %v1148_v5 }
 0x1e7   : > { %1788 = vmatprep.subr.mxu1 %v2333_v42 }
 0x1e8   : > { %1789 = vmatpush3.msra.mxu1 %v888_v35 }
 0x1e9   : > { %1790 = vmatprep.subr.mxu1 %v2333_v42 }
 0x1ea   : > { %1791 = vmatpush3.msra.mxu1 %v887_v34 }
 0x1eb   : > { %1792 = vmatprep.subr.mxu1 %v2333_v42 }
 0x1ec   : > { %1793 = vmatpush3.msra.mxu1 %v886_v24 }
 0x1ed   : > { %1794 = vmatprep.subr.mxu1 %v2333_v42 }
 0x1ee   : > { %1795 = vmatpush3.msra.mxu1 %v885_v23 }
 0x1ef   : > { %1796 = vmatprep.subr.mxu1 %v2333_v42 }
 0x1f0   : > { %1797 = vmatpush3.msra.mxu1 %v884_v13 }
 0x1f1   : > { %1798 = vmatprep.subr.mxu1 %v2333_v42 }
 0x1f2   : > { %1799 = vmatpush3.msra.mxu1 %v883_v12 }
 0x1f3   : > { %1800 = vmatprep.subr.mxu1 %v2333_v42 }
 0x1f4   : > { %1801 = vmatpush3.msra.mxu1 %v882_v2 }
 0x1f5   : > { %1802 = vmatprep.subr.mxu1 %v2333_v42 }
 0x1f6   : > { %1803 = vmatpush3.msra.mxu1 %v881_v1 }
 0x1f7   : > { %1804 = vmatprep.subr.mxu1 %v2333_v42 }
 0x1f8   : > { %1805 = vmatpush3.msra.mxu1 %v880_v56 }
 0x1f9   : > { %1806 = vmatprep.subr.mxu1 %v2333_v42 }
 0x1fa   : > { %1807 = vmatpush3.msra.mxu1 %v879_v55 }
 0x26d   : > { %v2812_v47 = vpop.f32.mrf.mxu1 }
 0x26e   : > { %v1000_v45 = vadd.f32 %v2812_v47, %v2823_v19 }
 0x26f   : > { %v2814_v60 = vpop.f32.mrf.mxu1 }
 0x270   : > { %v992_v51 = vadd.f32 %v2823_v19, %v2814_v60 }
 0x271   : > { %v1728_v63 = vpop.f32.mrf.mxu1 }
 0x272   : > { %v1003_v43 = vadd.f32 %v1728_v63, %v2823_v19  ;;  %v1166_v63 = vshrl.u32 %v1142_v62, 7 }
 0x273   : > { %v2816_v1 = vpop.f32.mrf.mxu1 }
 0x274   : > { %v995_v48 = vadd.f32 %v2823_v19, %v2816_v1  ;;  %v1167_v1 = vsub.s32 0, %v1166_v63 }
 0x27d   : > { %v1731_v52 = vpop.f32.mrf.mxu1 }
 0x27e   : > { %v1016_v36 = vadd.f32 %v1731_v52, %v2823_v19 }
 0x27f   : > { %v1007_v56 = vpop.f32.mrf.mxu1 }
 0x280   : > { %v1008_v40 = vadd.f32 %v2823_v19, %v1007_v56 }
 0x281   : > { %v1732_v2 = vpop.f32.mrf.mxu1 }
 0x282   : > { %v1019_v34 = vadd.f32 %v1732_v2, %v2823_v19 }
 0x283   : > { %v1010_v7 = vpop.f32.mrf.mxu1 }
 0x284   : > { %v1011_v38 = vadd.f32 %v2823_v19, %v1010_v7 }
 0x28d   : > { %v1735_v10 = vpop.f32.mrf.mxu1 }
 0x28e   : > { %v1032_v28 = vadd.f32 %v1735_v10, %v2823_v19 }
 0x28f   : > { %v1023_v50 = vpop.f32.mrf.mxu1 }
 0x290   : > { %v1024_v32 = vadd.f32 %v2823_v19, %v1023_v50 }
 0x291   : > { %v1736_v55 = vpop.f32.mrf.mxu1 }
 0x292   : > { %v1035_v26 = vadd.f32 %v1736_v55, %v2823_v19 }
 0x293   : > { %v1026_v12 = vpop.f32.mrf.mxu1 }
 0x294   : > { %v1027_v30 = vadd.f32 %v2823_v19, %v1026_v12 }
 0x29d   : > { %v1739_v13 = vpop.f32.mrf.mxu1 }
 0x29e   : > { %v1048_v22 = vadd.f32 %v1739_v13, %v2823_v19  ;;  %v1172_v13 = vld [vmem:[#allocation3] sm:$0x1] }
 0x29f   : > { %v1039_v18 = vpop.f32.mrf.mxu1 }
 0x2a0   : > { %v1040_v25 = vadd.f32 %v2823_v19, %v1039_v18 }
 0x2a1   : > { %v1740_v20 = vpop.f32.mrf.mxu1 }
 0x2a2   : > { %v1051_v21 = vadd.f32 %v1740_v20, %v2823_v19 }
 0x2a3   : > { %v1042_v23 = vpop.f32.mrf.mxu1 }
 0x2a4   : > { %2009 = vtanh.f32 %v1051_v21  ;;  %v1043_v24 = vadd.f32 %v2823_v19, %v1042_v23  ;;  %v1180_v23 = vld [vmem:[#allocation4] sm:$0x1] }
 0x2a5   : > { %2011 = vtanh.f32 %v1048_v22 }
 0x2a6   : > { %2013 = vtanh.f32 %v1043_v24 }
 0x2a7   : > { %2015 = vtanh.f32 %v1040_v25 }
 0x2a8   : > { %2017 = vtanh.f32 %v1035_v26 }
 0x2a9   : > { %2019 = vtanh.f32 %v1032_v28 }
 0x2aa   : > { %2021 = vtanh.f32 %v1027_v30 }
 0x2ab   : > { %2023 = vtanh.f32 %v1024_v32 }
 0x2ac   : > { %2025 = vtanh.f32 %v1019_v34 }
 0x2ad   : > { %2027 = vtanh.f32 %v1016_v36 }
 0x2ae   : > { %2029 = vtanh.f32 %v1011_v38 }
 0x2af   : > { %2031 = vtanh.f32 %v1008_v40 }
 0x2b0   : > { %2033 = vtanh.f32 %v1003_v43 }
 0x2b1   : > { %v2010_v27 = vpop.eup %2009  ;;  %2035 = vtanh.f32 %v1000_v45 }
 0x2b2   : > { %1742 = vmatpush3.xpose.msra.mxu0 %v2010_v27  ;;  %v2012_v29 = vpop.eup %2011  ;;  %2037 = vtanh.f32 %v995_v48 }
 0x2b3   : > { %1743 = vmatprep.subr.mxu0 %v2333_v42  ;;  %v2014_v31 = vpop.eup %2013  ;;  %2039 = vtanh.f32 %v992_v51 }
 0x2b4   : > { %v2016_v33 = vpop.eup %2015 }
 0x2b5   : > { %v2018_v35 = vpop.eup %2017 }
 0x2b6   : > { %1744 = vmatpush3.xpose.msra.mxu0 %v2012_v29  ;;  %v2020_v37 = vpop.eup %2019 }
 0x2b7   : > { %1745 = vmatprep.subr.mxu0 %v2333_v42  ;;  %v2022_v39 = vpop.eup %2021 }
 0x2b8   : > { %v2024_v41 = vpop.eup %2023 }
 0x2b9   : > { %v2026_v44 = vpop.eup %2025 }
 0x2ba   : > { %1746 = vmatpush3.xpose.msra.mxu0 %v2014_v31  ;;  %v2028_v46 = vpop.eup %2027 }
 0x2bb   : > { %1747 = vmatprep.subr.mxu0 %v2333_v42  ;;  %v2030_v49 = vpop.eup %2029 }
 0x2bc   : > { %v2032_v53 = vpop.eup %2031 }
 0x2bd   : > { %v2034_v54 = vpop.eup %2033 }
 0x2be   : > { %1748 = vmatpush3.xpose.msra.mxu0 %v2016_v33  ;;  %v2036_v57 = vpop.eup %2035 }
 0x2bf   : > { %1749 = vmatprep.subr.mxu0 %v2333_v42  ;;  %v2038_v58 = vpop.eup %2037 }
 0x2c0   : > { %v2040_v59 = vpop.eup %2039 }
 0x2c2   : > { %1750 = vmatpush3.xpose.msra.mxu0 %v2018_v35 }
 0x2c3   : > { %1751 = vmatprep.subr.mxu0 %v2333_v42 }
 0x2c6   : > { %1752 = vmatpush3.xpose.msra.mxu0 %v2020_v37 }
 0x2c7   : > { %1753 = vmatprep.subr.mxu0 %v2333_v42 }
 0x2ca   : > { %1754 = vmatpush3.xpose.msra.mxu0 %v2022_v39 }
 0x2cb   : > { %1755 = vmatprep.subr.mxu0 %v2333_v42 }
 0x2ce   : > { %1756 = vmatpush3.xpose.msra.mxu0 %v2024_v41 }
 0x2cf   : > { %1757 = vmatprep.subr.mxu0 %v2333_v42 }
 0x2d2   : > { %1758 = vmatpush3.xpose.msra.mxu0 %v2026_v44 }
 0x2d3   : > { %1759 = vmatprep.subr.mxu0 %v2333_v42 }
 0x2d6   : > { %1760 = vmatpush3.xpose.msra.mxu0 %v2028_v46 }
 0x2d7   : > { %1761 = vmatprep.subr.mxu0 %v2333_v42 }
 0x2da   : > { %1762 = vmatpush3.xpose.msra.mxu0 %v2030_v49 }
 0x2db   : > { %1763 = vmatprep.subr.mxu0 %v2333_v42 }
 0x2de   : > { %1764 = vmatpush3.xpose.msra.mxu0 %v2032_v53 }
 0x2df   : > { %1765 = vmatprep.subr.mxu0 %v2333_v42 }
 0x2e2   : > { %1766 = vmatpush3.xpose.msra.mxu0 %v2034_v54 }
 0x2e3   : > { %1767 = vmatprep.subr.mxu0 %v2333_v42 }
 0x2e6   : > { %1768 = vmatpush3.xpose.msra.mxu0 %v2036_v57 }
 0x2e7   : > { %1769 = vmatprep.subr.mxu0 %v2333_v42 }
 0x2ea   : > { %1770 = vmatpush3.xpose.msra.mxu0 %v2038_v58 }
 0x2eb   : > { %1771 = vmatprep.subr.mxu0 %v2333_v42 }
 0x2ee   : > { %1772 = vmatpush3.xpose.msra.mxu0 %v2040_v59 }
 0x2f1   : > { %1774 = vmatmul.mubr.f32.vlgmr.msra.gmra.mxu0 %v599_v61 }
 0x3b1   : > { %v1138_v8 = vpop.f32.mrf.mxu0 }
 0x3b2   : > { %v1139_v42 = vadd.f32 %v1138_v8, %v1071_v6 }
 0x3b3   : > { %v1775_v9 = vpop.f32.mrf.mxu0 }
 0x3b4   : > { %v1150_v11 = vsel %vm1149_vm2, %v1139_v42, -1e+30 }
 0x3b5   : > { %v1153_v14 = vsel %vm1152_vm3, %v1150_v11, -inf  ;;  %1264 = vst [vmem:[%s507_s4] sm:$0x1] %v1150_v11 }
 0x3b6   : > { %1154 = vmax.xlane.f32.xlu0 %v1153_v14 }
 0x43f   : > { %v1155_v17 = vpop.xlane.xlu0 %1154 }
 0x440   : > { %v1156_v47 = vmax.f32 %v1151_v16, %v1155_v17 }
 0x442   : > { %v1157_v60 = vsub.f32 %v1151_v16, %v1156_v47  ;;  %1263 = vst.msk [vmem:[#allocation2] sm:$0x1] %vm1178_vm4, %v1156_v47  ;;  %1162 = vperm.xlu0 %1959, %v1156_v47  }
 0x444   : > { %v1158_v50 = vmul.f32 1.442695, %v1157_v60 }
 0x4bd   : > { %v1163_v52 = vpop.permute.xlu0 %1162 }
 0x4be   : > { %v1168_v56 = vrot.slane %v1163_v52, %v1167_v1 }
 0x4c0   : > { %v1169_v2 = vsub.f32 %v1150_v11, %v1168_v56 }
 0x4c2   : > { %v1170_v7 = vmul.f32 1.442695, %v1169_v2 }
 0x4c4   : > { %2041 = vpow2.f32 %v1170_v7 }
 0x4c5   : > { %2043 = vpow2.f32 %v1158_v50 }
 0x4d1   : > { %v2042_v10 = vpop.eup %2041 }
 0x4d2   : > { %1809 = vmatmul.mubr.f32.vlgmr.msra.gmra.mxu1 %v2042_v10  ;;  %v1174_v55 = vsel %vm1152_vm3, %v2042_v10, 0.0  ;;  %v2044_v12 = vpop.eup %2043 }
 0x4d3   : > { %1175 = vadd.xlane.f32.xlu1 %v1174_v55  ;;  %v1173_v18 = vmul.f32 %v2044_v12, %v1172_v13 }
 0x4e4   : > { %1183 = vperm.xlu1 %1960, %v2044_v12  }
 0x55c   : > { %v1176_v19 = vpop.xlane.xlu1 %1175 }
 0x55d   : > { %v1177_v20 = vadd.f32 %v1176_v19, %v1173_v18 }
 0x55f   : > { %1179 = vst.msk [vmem:[#allocation3] sm:$0x1] %vm1178_vm4, %v1177_v20 }
 0x560   : > { %v1184_v21 = vpop.permute.xlu1 %1183 }
 0x561   : > { %v1189_v22 = vrot.slane %v1184_v21, %v1167_v1 }
 0x563   : > { %v1190_v24 = vmul.f32 %v1189_v22, %v1180_v23 }
 0x591   : > { %1268 = sbr.rel (%p1586_p8) target bundleno = 1575 (0x627), region = 80 }
 0x592   : > { %v1257_v25 = vpop.f32.mrf.mxu1 }
 0x593   : > { %v1261_v26 = vadd.f32 %v1257_v25, %v1190_v24 }
 0x594   : > { %v1810_v27 = vpop.f32.mrf.mxu1 }
 0x595   : > { %1262 = vst [vmem:[#allocation4] sm:$0x1] %v1261_v26 }
 0x596   : > { %v1270_v28 = vld [vmem:[#allocation3] sm:$0x1]  ;;  %v2336_v29 = vmov 0  }
 0x597   : > { %2045 = vset.pattern.permute.xlu0 %v2336_v29 }
 0x598   : > { %1273 = vperm.xlu0 %2045, %v1270_v28  }
 0x59c   : > { %v1269_v32 = vld [vmem:[#allocation4] sm:$0x1] }
 0x613   : > { %v1274_v30 = vpop.permute.xlu0 %1273 }
 0x614   : > { %v1279_v31 = vrot.slane %v1274_v30, %v1167_v1 }
 0x616   : > { %2046 = vrcp.f32 %v1279_v31 }
 0x623   : > { %v2047_v33 = vpop.eup %2046 }
 0x624   : > { %v1281_v34 = vmul.f32 %v2047_v33, %v1269_v32 }
 0x626   : > { %1282 = vst [vmem:[%s513_s10] sm:$0x1] %v1281_v34 }
 0x627 PF: > { %s3059_s21 = sld [smem:[#allocation29_spill]]  ;;  %s1302_s9 = sshll.u32 %s507_s4, 4  ;;  %s1303_s9 = int_to_ptr.vmem [resolvable:$true] %s1302_s9 }
 0x628   : > { %s3060_s3 = sld [smem:[#allocation28_spill]]  ;;  %s1284_s6 = scalar_lea.sflag [#allocation7], %s2631_s26 }
 0x629   : > { %s3061_s0 = sld [smem:[#allocation37_spill]]  ;;  %s2158_s20 = scalar_lea.vmem %s1303_s9, 16 }
 0x62a   : > { %s3062_s25 = sld [smem:[#allocation44_spill]]  ;;  %p2159_p10 = scmp.ne.s32.totalorder %s1303_s9, %s2158_s20 }
 0x62b   : > { %s2337_s27 = smov [#allocation15]  }
 0x62c   : > { %s2162_s28 = sshll.u32 %s2337_s27, 4  ;;  %s2163_s28 = int_to_ptr.vmem [resolvable:$false] %s2162_s28 }
 0x62d   : > { %s1587_s16 = sshll.u32 %s3059_s21, 1  ;;  %s2164_s1 = scalar_lea.vmem %s2163_s28, 32 }
 0x62e   : > { %s1298_s15 = sadd.s32 %s3060_s3, %s1587_s16  ;;  %p2165_p2 = scmp.lt.s32.totalorder %s1303_s9, %s2163_s28 }
 0x62f   : > { %s1588_s12 = sshll.u32 %s1298_s15, 4  ;;  %p3063_p11 = scmp.ne.s32.totalorder %s3061_s0, 0 }
 0x630   : > { %s1300_s23 = scalar_lea.hbm %s3062_s25, %s1588_s12  ;;  %p2166_p6 = scmp.lt.s32.totalorder %s2164_s1, %s2158_s20 }
 0x631   : > { %p2160_p12 = pnand %p2159_p10, %p3063_p11 }
 0x632   : > { %p2167_p9 = por %p2166_p6, %p2165_p2 }
 0x633   : > { %p2161_p0 = pneg %p2160_p12 }
 0x635   : > { %p2168_p13 = pnand %p2167_p9, %p2161_p0 }
 0x637   : > { %2171 = shalt.err (!%p2168_p13)
}
 0x638   : > { %s2172_s4 = scalar_lea.hbm %s1300_s23, 16  ;;  %s2176_s24 = scalar_lea.hbm %s3062_s25, 64 }
 0x639   : > { %p2173_p7 = scmp.ne.s32.totalorder %s1300_s23, %s2172_s4  ;;  %p2177_p4 = scmp.lt.s32.totalorder %s1300_s23, %s3062_s25 }
 0x63a   : > { %p2178_p3 = scmp.lt.s32.totalorder %s2176_s24, %s2172_s4 }
 0x63b   : > { %p2174_p1 = pnand %p2173_p7, %p3063_p11 }
 0x63c   : > { %p2179_p8 = por %p2178_p3, %p2177_p4 }
 0x63d   : > { %p2175_p5 = pneg %p2174_p1 }
 0x63f   : > { %p2180_p10 = pnand %p2179_p8, %p2175_p5 }
 0x641   : > { %2183 = shalt.err (!%p2180_p10)
}
 0x642   : > { %s3064_s15 = sld [smem:[#allocation33_spill]]  ;;  %s1589_s12 = sshll.u32 %s3059_s21, 4 }
 0x643   : > { %1825 = dma.vmem_to_hbm [thread:$0]  (%p3063_p11), %s1303_s9, 16, %s1300_s23, %s1284_s6  }
 0x644   : > { %s1315_s22 = sshll.u32 %s513_s10, 4  ;;  %s3065_s27 = sld [smem:[#allocation45_spill]]  ;;  %s1316_s22 = int_to_ptr.vmem [resolvable:$true] %s1315_s22 }
 0x645   : > { %s1288_s1 = scalar_lea.sflag [#allocation17], %s2643_s13  ;;  %s2184_s4 = scalar_lea.vmem %s1316_s22, 16 }
 0x646   : > { %p2185_p12 = scmp.ne.s32.totalorder %s1316_s22, %s2184_s4  ;;  %s2338_s0 = smov [#allocation16]  }
 0x647   : > { %s2188_s26 = sshll.u32 %s2338_s0, 4  ;;  %s2189_s26 = int_to_ptr.vmem [resolvable:$false] %s2188_s26 }
 0x648   : > { %p3066_p0 = scmp.ne.s32.totalorder %s3064_s15, 0  ;;  %s2190_s8 = scalar_lea.vmem %s2189_s26, 32 }
 0x649   : > { %p2191_p9 = scmp.lt.s32.totalorder %s1316_s22, %s2189_s26  ;;  %p2192_p11 = scmp.lt.s32.totalorder %s2190_s8, %s2184_s4 }
 0x64a   : > { %s1313_s28 = scalar_lea.hbm %s3065_s27, %s1589_s12  ;;  %p2186_p2 = pnand %p2185_p12, %p3066_p0 }
 0x64b   : > { %p2193_p13 = por %p2192_p11, %p2191_p9 }
 0x64c   : > { %p2187_p6 = pneg %p2186_p2 }
 0x64e   : > { %p2194_p7 = pnand %p2193_p13, %p2187_p6 }
 0x650   : > { %2197 = shalt.err (!%p2194_p7)
}
 0x651   : > { %s2198_s10 = scalar_lea.hbm %s1313_s28, 16  ;;  %s2202_s9 = scalar_lea.hbm %s3065_s27, 32 }
 0x652   : > { %p2199_p1 = scmp.ne.s32.totalorder %s1313_s28, %s2198_s10  ;;  %p2203_p3 = scmp.lt.s32.totalorder %s1313_s28, %s3065_s27 }
 0x653   : > { %p2204_p8 = scmp.lt.s32.totalorder %s2202_s9, %s2198_s10 }
 0x654   : > { %p2200_p5 = pnand %p2199_p1, %p3066_p0 }
 0x655   : > { %p2205_p10 = por %p2204_p8, %p2203_p3 }
 0x656   : > { %p2201_p4 = pneg %p2200_p5 }
 0x658   : > { %p2206_p12 = pnand %p2205_p10, %p2201_p4 }
 0x65a   : > { %2209 = shalt.err (!%p2206_p12)
}
 0x65b   : > { %1826 = dma.vmem_to_hbm [thread:$0]  (%p3066_p0), %s1316_s22, 16, %s1313_s28, %s1288_s1  }
 0x65c PF: > { %s3067_s24 = sld [smem:[#allocation26_spill]]  ;;  %p1858_p2 = scmp.ge.s32.totalorder %s2320_s19, 2 }
 0x65d   : > { %s3068_s3 = sld [smem:[#allocation34_spill]] }
 0x662   : > { %s1327_s16 = sand.u32 1, %s3067_s24  }
 0x663   : > { %p3069_p6 = scmp.ne.s32.totalorder %s3068_s3, 0  ;;  %s1328_s12 = scalar_lea.sflag [#allocation7], %s1327_s16 }
 0x665   : > { %p1847_p9 = pnand %p1858_p2, %p3069_p6 }
 0x667   : > { %p1848_p11 = pneg %p1847_p9 }
 0x669   : > { %2271 = dma.done.wait (%p1848_p11), %s1328_s12, 16  }
 0x66a   : > { %2273 = vsyncadd (%p1848_p11), %s1328_s12, 4294967280  ;;  %s3070_s29 = sld [smem:[#allocation24_spill]] }
 0x66b   : > { %s3071_s20 = sld [smem:[#allocation35_spill]] }
 0x670   : > { %s1335_s4 = sand.u32 1, %s3070_s29  }
 0x671   : > { %p3072_p13 = scmp.ne.s32.totalorder %s3071_s20, 0  ;;  %s1336_s15 = scalar_lea.sflag [#allocation17], %s1335_s4 }
 0x673   : > { %p1850_p7 = pnand %p1858_p2, %p3072_p13 }
 0x675   : > { %p1851_p1 = pneg %p1850_p7 }
 0x677   : > { %2275 = dma.done.wait (%p1851_p1), %s1336_s15, 16  }
 0x678   : > { %2277 = vsyncadd (%p1851_p1), %s1336_s15, 4294967280  ;;  %s34_s19 = sadd.s32 1, %s2320_s19   ;;  %s3073_s22 = sld [smem:[#allocation25_spill]] }
 0x679   : > { %p31_p0 = scmp.ge.s32.totalorder %s34_s19, 6   ;;  %s3074_s12 = sld [smem:[#allocation27_spill]] }
 0x67a   : > { %s3075_s15 = sld [smem:[#allocation30_spill]]  ;;  %s3077_s1 = smov %s3091_s30 }
 0x67b   : > { %s3076_s28 = sld [smem:[#allocation36_spill]]  ;;  %s3079_s10 = smov %s2288_s11 }
 0x67c   : > { %s3080_s11 = smov %s2585_s17  ;;  %s3081_s13 = smov %s2300_s14 }
 0x67d   : > { %s3082_s14 = smov %s2588_s7  ;;  %s3083_s16 = smov %s2316_s18 }
 0x67e   : > { %s3078_s30 = smov %s3073_s22  ;;  %s3085_s18 = smov %s3077_s1 }
 0x67f   :  { %33 = sbr.rel (!%p31_p0) target bundleno = 24 (0x18), region = 165 }
 0x681   : > { %s3084_s17 = smov %s3076_s28 }
 0x684   :  { %1340 = vsyncpa [#allocation6], 1 }
 0x685   :  { %1342 = vsyncpa [#allocation6 + $0x1], 1 }
 0x686   :  { %1343 = vsyncpa [#allocation13], 1 }
 0x687   :  { %1345 = vsyncpa [#allocation13 + $0x1], 1 }
 0x688   :  { %1346 = vsyncpa [#allocation7], 1 }
 0x689   :  { %1348 = vsyncpa [#allocation7 + $0x1], 1 }
 0x68a   :  { %1349 = vsyncpa [#allocation17], 1 }
 0x68b   :  { %1351 = vsyncpa [#allocation17 + $0x1], 1 }
 0x68c   :  { %1352 = vsyncpa [#allocation8], 1 }
 0x68d   :  { %1354 = vsyncpa [#allocation8 + $0x1], 1 }
 0x68e   :  { %1355 = vsyncpa [#allocation9], 1 }
 0x68f   :  { %1357 = vsyncpa [#allocation9 + $0x1], 1 }

</bundles_post_ra>
